<compile_context>
chip_gen: v5e
topology: v5e:2x2
jax: 0.10.0
libtpu: 0.0.40
codegen_flags: <defaults>
</compile_context>

<pallas_src>
import numpy as np
import jax
import jax.numpy as jnp
from jax import lax
from jax.experimental import pallas as pl
from jax.experimental.pallas import tpu as pltpu


# ------------------------------- fused kernel --------------------------------

def _shift_rows(m, k):
    """result[r, :] = m[r + k, :] for r < R - k; the wrapped tail rows are garbage
    but are never consumed (the row-pool matrices have zero columns there)."""
    if k == 0:
        return m
    return jnp.concatenate([m[k:], m[:k]], axis=0)


def lenet5_kernel(x_ref, w1b_ref, b1t_ref, pr1_ref, qc1_ref,
                  w2b_ref, b2t_ref, qc2_ref, pr2_ref, w3h_ref, b3_ref,
                  wf1_ref, bf1_ref, wf2_ref, bf2_ref, o_ref):
    f32 = jnp.float32
    xv = x_ref[...]                                              # (NB*32, 32)

    # ---- Conv2d(1,6,5) + Tanh: banded matmul over (kw), row shift over kh.
    acc = jnp.dot(xv, w1b_ref[0], preferred_element_type=f32)
    for kh in range(1, 5):
        acc = acc + jnp.dot(_shift_rows(xv, kh), w1b_ref[kh],
                            preferred_element_type=f32)
    y1 = jnp.tanh(acc + b1t_ref[...])                            # (NB*32, 168) lanes=(j,c)

    # ---- AvgPool2d(2): two matmuls (row pool drops rows i>=28 per sample).
    h1 = jnp.dot(jnp.dot(pr1_ref[...], y1, preferred_element_type=f32),
                 qc1_ref[...], preferred_element_type=f32)       # (NB*14, 84) lanes=(w,c)

    # ---- Conv2d(6,16,5) + Tanh: same banded + row-shift pattern.
    acc = jnp.dot(h1, w2b_ref[0], preferred_element_type=f32)
    for kh in range(1, 5):
        acc = acc + jnp.dot(_shift_rows(h1, kh), w2b_ref[kh],
                            preferred_element_type=f32)
    y2 = jnp.tanh(acc + b2t_ref[...])                            # (NB*14, 160) lanes=(j,c)

    # ---- AvgPool2d(2): column pool as one matmul; row pool folded into pr2 below.
    y2 = jnp.dot(y2, qc2_ref[...], preferred_element_type=f32)   # (NB*14, 80)

    # ---- Conv2d(16,120,5) (1x1 spatial out): per-h row pool+select, then contract.
    acc = jnp.dot(jnp.dot(pr2_ref[0], y2, preferred_element_type=f32),
                  w3h_ref[0], preferred_element_type=f32)
    for h in range(1, 5):
        acc = acc + jnp.dot(jnp.dot(pr2_ref[h], y2, preferred_element_type=f32),
                            w3h_ref[h], preferred_element_type=f32)
    z = jnp.tanh(acc + b3_ref[...])                              # (NB, 120)

    # ---- classifier: Linear(120,84)+Tanh, Linear(84, n_classes padded to 128).
    z = jnp.tanh(jnp.dot(z, wf1_ref[...], preferred_element_type=f32) + bf1_ref[...])
    o_ref[...] = (jnp.dot(z, wf2_ref[...], preferred_element_type=f32)
                  + bf2_ref[...]).astype(o_ref.dtype)


# ----------------------------- weight / const prep ----------------------------

def _banded_weights(p):
    """Fold (kw, cin) conv taps into lane-axis 'banded' matrices, one per kh."""
    hi = lax.Precision.HIGHEST   # exact selection of f32 weight values
    # conv1: w1b[kh, m, j*6+c] = w1[c, 0, kh, m-j]  for 0 <= m-j <= 4
    m = np.arange(32)[:, None, None]
    j = np.arange(28)[None, :, None]
    kw = np.arange(5)[None, None, :]
    p1 = (m == j + kw).astype(np.float32)                            # (32, 28, 5)
    w1b = jnp.einsum('mjk,chk->hmjc', jnp.asarray(p1), p['w1'][:, 0],
                     precision=hi).reshape(5, 32, 28 * 6)            # (5, 32, 168)
    # conv2: w2b[kh, wi*6+ci, j*16+co] = w2[co, ci, kh, wi-j]  for 0 <= wi-j <= 4
    m2 = np.arange(84)[:, None, None, None]
    j2 = np.arange(10)[None, :, None, None]
    kw2 = np.arange(5)[None, None, :, None]
    ci = np.arange(6)[None, None, None, :]
    p2 = (m2 == (j2 + kw2) * 6 + ci).astype(np.float32)              # (84, 10, 5, 6)
    w2b = jnp.einsum('mjkc,ochk->hmjo', jnp.asarray(p2), p['w2'],
                     precision=hi).reshape(5, 84, 10 * 16)           # (5, 84, 160)
    # conv3 (5x5 -> 1x1): w3h[h, w*16+ci, co] = w3[co, ci, h, w]
    w3h = p['w3'].transpose(2, 3, 1, 0).reshape(5, 80, 120)
    return w1b, w2b, w3h


def _pool_constants(nb):
    """Constant 0 / 0.5 matrices implementing the 2x2 average pools as matmuls."""
    pr1 = np.zeros((nb * 14, nb * 32), np.float32)   # rows: select+pool conv1 rows
    pr2 = np.zeros((5, nb, nb * 14), np.float32)     # per-h: select+pool conv2 rows
    for n in range(nb):
        for r in range(14):
            pr1[n * 14 + r, n * 32 + 2 * r] = 0.5
            pr1[n * 14 + r, n * 32 + 2 * r + 1] = 0.5
        for h in range(5):
            pr2[h, n, n * 14 + 2 * h] = 0.5
            pr2[h, n, n * 14 + 2 * h + 1] = 0.5
    qc1 = np.zeros((168, 84), np.float32)            # lanes: pool conv1 cols
    for j in range(28):
        for c in range(6):
            qc1[j * 6 + c, (j // 2) * 6 + c] = 0.5
    qc2 = np.zeros((160, 80), np.float32)            # lanes: pool conv2 cols
    for j in range(10):
        for c in range(16):
            qc2[j * 16 + c, (j // 2) * 16 + c] = 0.5
    return pr1, qc1, qc2, pr2


# ------------------------------- JAX wrapper ----------------------------------

def lenet5_forward(x, p, n_classes=10, block_n=8):
    """x: (N, 1, 32, 32) float32 -> logits (N, n_classes)."""
    N = x.shape[0]
    assert x.shape[1:] == (1, 32, 32)
    nb = min(N, block_n)
    g = -(-N // nb)
    n_pad = g * nb

    xs = x[:, 0, :, :]
    if n_pad != N:
        xs = jnp.pad(xs, ((0, n_pad - N), (0, 0), (0, 0)))
    xs = xs.reshape(n_pad * 32, 32)                              # rows = (n, input row)

    w1b, w2b, w3h = _banded_weights(p)
    pr1_np, qc1_np, qc2_np, pr2_np = _pool_constants(nb)
    pr1, qc1, qc2, pr2 = (jnp.asarray(a) for a in (pr1_np, qc1_np, qc2_np, pr2_np))

    c_pad = ((n_classes + 127) // 128) * 128                     # lane-dense output
    b1t = jnp.tile(p['b1'], 28)[None, :]                         # (1, 168)
    b2t = jnp.tile(p['b2'], 10)[None, :]                         # (1, 160)
    b3 = p['b3'][None, :]
    wf1 = p['wf1'].T
    bf1 = p['bf1'][None, :]
    wf2p = jnp.pad(p['wf2'].T, ((0, 0), (0, c_pad - n_classes)))
    bf2p = jnp.pad(p['bf2'][None, :], ((0, 0), (0, c_pad - n_classes)))

    weight_args = (w1b, b1t, pr1, qc1, w2b, b2t, qc2, pr2, w3h, b3,
                   wf1, bf1, wf2p, bf2p)

    def _full_spec(a):
        nd = a.ndim
        return pl.BlockSpec(a.shape, lambda i, _nd=nd: (0,) * _nd)

    in_specs = ([pl.BlockSpec((nb * 32, 32), lambda i: (i, 0))]
                + [_full_spec(a) for a in weight_args])

    out = pl.pallas_call(
        lenet5_kernel,
        out_shape=jax.ShapeDtypeStruct((n_pad, c_pad), jnp.float32),
        grid=(g,),
        in_specs=in_specs,
        out_specs=pl.BlockSpec((nb, c_pad), lambda i: (i, 0)),
        compiler_params=pltpu.CompilerParams(dimension_semantics=("parallel",)),
    )(xs, *weight_args)
    return out[:N, :n_classes]


# ------------------------------ pure-JAX reference ----------------------------

def ref_forward(x, p):
    def conv(x, w, b):
        y = lax.conv_general_dilated(x, w, window_strides=(1, 1), padding='VALID',
                                     dimension_numbers=('NCHW', 'OIHW', 'NCHW'),
                                     precision=lax.Precision.HIGHEST)
        return y + b[None, :, None, None]

    def pool(x):
        n, c, h, w = x.shape
        return x.reshape(n, c, h // 2, 2, w // 2, 2).mean(axis=(3, 5))

    h = pool(jnp.tanh(conv(x, p['w1'], p['b1'])))
    h = pool(jnp.tanh(conv(h, p['w2'], p['b2'])))
    h = jnp.tanh(conv(h, p['w3'], p['b3'])).reshape(x.shape[0], -1)
    h = jnp.tanh(jnp.dot(h, p['wf1'].T, precision=lax.Precision.HIGHEST) + p['bf1'])
    return jnp.dot(h, p['wf2'].T, precision=lax.Precision.HIGHEST) + p['bf2']


# ----------------------------------- main --------------------------------------

if __name__ == "__main__":
    n_classes = 10
    key = jax.random.PRNGKey(0)
    ks = jax.random.split(key, 11)

    # Deterministic synthetic parameters (PyTorch layer shapes: OIHW conv, (out,in) linear).
    params = {
        'w1': 0.10 * jax.random.normal(ks[0], (6, 1, 5, 5), jnp.float32),
        'b1': 0.10 * jax.random.normal(ks[1], (6,), jnp.float32),
        'w2': 0.10 * jax.random.normal(ks[2], (16, 6, 5, 5), jnp.float32),
        'b2': 0.10 * jax.random.normal(ks[3], (16,), jnp.float32),
        'w3': 0.05 * jax.random.normal(ks[4], (120, 16, 5, 5), jnp.float32),
        'b3': 0.10 * jax.random.normal(ks[5], (120,), jnp.float32),
        'wf1': 0.10 * jax.random.normal(ks[6], (84, 120), jnp.float32),
        'bf1': 0.10 * jax.random.normal(ks[7], (84,), jnp.float32),
        'wf2': 0.10 * jax.random.normal(ks[8], (n_classes, 84), jnp.float32),
        'bf2': 0.10 * jax.random.normal(ks[9], (n_classes,), jnp.float32),
    }

    # LeNet-5 expects 32x32 single-channel input (so conv3 reduces to 1x1).
    x = jax.random.normal(ks[10], (2, 1, 32, 32), jnp.float32)

    fwd = jax.jit(lambda xx, pp: lenet5_forward(xx, pp, n_classes))
    logits = jax.block_until_ready(fwd(x, params))

    ref = ref_forward(x, params)
    assert logits.shape == (2, n_classes)
    # Reference uses Precision.HIGHEST; in-kernel MXU matmuls run at default (bf16-pass)
    # precision, hence the slightly relaxed tolerance.
    assert jnp.allclose(logits, ref, atol=2e-2, rtol=2e-2)

    print("KERNEL_OK")
</pallas_src>

<mosaic_0001>
module attributes {stable_mosaic.version = 11 : i64} {
  func.func @lenet5_kernel(%arg0: i32, %arg1: memref<64x32xf32, #tpu.memory_space<vmem>>, %arg2: memref<5x32x168xf32, #tpu.memory_space<vmem>>, %arg3: memref<1x168xf32, #tpu.memory_space<vmem>>, %arg4: memref<28x64xf32, #tpu.memory_space<vmem>>, %arg5: memref<168x84xf32, #tpu.memory_space<vmem>>, %arg6: memref<5x84x160xf32, #tpu.memory_space<vmem>>, %arg7: memref<1x160xf32, #tpu.memory_space<vmem>>, %arg8: memref<160x80xf32, #tpu.memory_space<vmem>>, %arg9: memref<5x2x28xf32, #tpu.memory_space<vmem>>, %arg10: memref<5x80x120xf32, #tpu.memory_space<vmem>>, %arg11: memref<1x120xf32, #tpu.memory_space<vmem>>, %arg12: memref<120x84xf32, #tpu.memory_space<vmem>>, %arg13: memref<1x84xf32, #tpu.memory_space<vmem>>, %arg14: memref<84x128xf32, #tpu.memory_space<vmem>>, %arg15: memref<1x128xf32, #tpu.memory_space<vmem>>, %arg16: memref<2x128xf32, #tpu.memory_space<vmem>>) attributes {dimension_semantics = [#tpu.dimension_semantics<parallel>], iteration_bounds = array<i64: 1>, scalar_prefetch = 0 : i64, scratch_operands = 0 : i64, tpu.core_type = #tpu.core_type<tc>, window_params = [{transform_indices = @transform_0, window_bounds = array<i64: 64, 32>}, {pipeline_mode = #tpu.pipeline_mode<synchronous>, transform_indices = @transform_1, window_bounds = array<i64: 5, 32, 168>}, {pipeline_mode = #tpu.pipeline_mode<synchronous>, transform_indices = @transform_2, window_bounds = array<i64: 1, 168>}, {pipeline_mode = #tpu.pipeline_mode<synchronous>, transform_indices = @transform_3, window_bounds = array<i64: 28, 64>}, {pipeline_mode = #tpu.pipeline_mode<synchronous>, transform_indices = @transform_4, window_bounds = array<i64: 168, 84>}, {pipeline_mode = #tpu.pipeline_mode<synchronous>, transform_indices = @transform_5, window_bounds = array<i64: 5, 84, 160>}, {pipeline_mode = #tpu.pipeline_mode<synchronous>, transform_indices = @transform_6, window_bounds = array<i64: 1, 160>}, {pipeline_mode = #tpu.pipeline_mode<synchronous>, transform_indices = @transform_7, window_bounds = array<i64: 160, 80>}, {pipeline_mode = #tpu.pipeline_mode<synchronous>, transform_indices = @transform_8, window_bounds = array<i64: 5, 2, 28>}, {pipeline_mode = #tpu.pipeline_mode<synchronous>, transform_indices = @transform_9, window_bounds = array<i64: 5, 80, 120>}, {pipeline_mode = #tpu.pipeline_mode<synchronous>, transform_indices = @transform_10, window_bounds = array<i64: 1, 120>}, {pipeline_mode = #tpu.pipeline_mode<synchronous>, transform_indices = @transform_11, window_bounds = array<i64: 120, 84>}, {pipeline_mode = #tpu.pipeline_mode<synchronous>, transform_indices = @transform_12, window_bounds = array<i64: 1, 84>}, {pipeline_mode = #tpu.pipeline_mode<synchronous>, transform_indices = @transform_13, window_bounds = array<i64: 84, 128>}, {pipeline_mode = #tpu.pipeline_mode<synchronous>, transform_indices = @transform_14, window_bounds = array<i64: 1, 128>}, {transform_indices = @transform_15, window_bounds = array<i64: 2, 128>}]} {
    %c0 = arith.constant 0 : index
    %c0_0 = arith.constant 0 : index
    %0 = vector.load %arg1[%c0, %c0_0] : memref<64x32xf32, #tpu.memory_space<vmem>>, vector<64x32xf32>
    %c0_1 = arith.constant 0 : index
    %c0_2 = arith.constant 0 : index
    %c0_3 = arith.constant 0 : index
    %1 = vector.load %arg2[%c0_1, %c0_2, %c0_3] : memref<5x32x168xf32, #tpu.memory_space<vmem>>, vector<1x32x168xf32>
    %2 = vector.shape_cast %1 : vector<1x32x168xf32> to vector<32x168xf32>
    %cst = arith.constant dense<0.000000e+00> : vector<64x168xf32>
    %3 = tpu.matmul %0, %2, %cst {dimension_numbers = #tpu.dot_dimension_numbers<[1], [0], [0], [1], [0, 0, 1, 1], [], []>} : vector<64x32xf32>, vector<32x168xf32>, vector<64x168xf32> -> vector<64x168xf32>
    %4 = vector.extract_strided_slice %0 {offsets = [1, 0], sizes = [63, 32], strides = [1, 1]} : vector<64x32xf32> to vector<63x32xf32>
    %5 = vector.extract_strided_slice %0 {offsets = [0, 0], sizes = [1, 32], strides = [1, 1]} : vector<64x32xf32> to vector<1x32xf32>
    %6 = tpu.concatenate %4, %5 in 0 : vector<63x32xf32>, vector<1x32xf32> -> vector<64x32xf32>
    %c1 = arith.constant 1 : index
    %c0_4 = arith.constant 0 : index
    %c0_5 = arith.constant 0 : index
    %7 = vector.load %arg2[%c1, %c0_4, %c0_5] : memref<5x32x168xf32, #tpu.memory_space<vmem>>, vector<1x32x168xf32>
    %8 = vector.shape_cast %7 : vector<1x32x168xf32> to vector<32x168xf32>
    %cst_6 = arith.constant dense<0.000000e+00> : vector<64x168xf32>
    %9 = tpu.matmul %6, %8, %cst_6 {dimension_numbers = #tpu.dot_dimension_numbers<[1], [0], [0], [1], [0, 0, 1, 1], [], []>} : vector<64x32xf32>, vector<32x168xf32>, vector<64x168xf32> -> vector<64x168xf32>
    %10 = arith.addf %3, %9 : vector<64x168xf32>
    %11 = vector.extract_strided_slice %0 {offsets = [2, 0], sizes = [62, 32], strides = [1, 1]} : vector<64x32xf32> to vector<62x32xf32>
    %12 = vector.extract_strided_slice %0 {offsets = [0, 0], sizes = [2, 32], strides = [1, 1]} : vector<64x32xf32> to vector<2x32xf32>
    %13 = tpu.concatenate %11, %12 in 0 : vector<62x32xf32>, vector<2x32xf32> -> vector<64x32xf32>
    %c2 = arith.constant 2 : index
    %c0_7 = arith.constant 0 : index
    %c0_8 = arith.constant 0 : index
    %14 = vector.load %arg2[%c2, %c0_7, %c0_8] : memref<5x32x168xf32, #tpu.memory_space<vmem>>, vector<1x32x168xf32>
    %15 = vector.shape_cast %14 : vector<1x32x168xf32> to vector<32x168xf32>
    %cst_9 = arith.constant dense<0.000000e+00> : vector<64x168xf32>
    %16 = tpu.matmul %13, %15, %cst_9 {dimension_numbers = #tpu.dot_dimension_numbers<[1], [0], [0], [1], [0, 0, 1, 1], [], []>} : vector<64x32xf32>, vector<32x168xf32>, vector<64x168xf32> -> vector<64x168xf32>
    %17 = arith.addf %10, %16 : vector<64x168xf32>
    %18 = vector.extract_strided_slice %0 {offsets = [3, 0], sizes = [61, 32], strides = [1, 1]} : vector<64x32xf32> to vector<61x32xf32>
    %19 = vector.extract_strided_slice %0 {offsets = [0, 0], sizes = [3, 32], strides = [1, 1]} : vector<64x32xf32> to vector<3x32xf32>
    %20 = tpu.concatenate %18, %19 in 0 : vector<61x32xf32>, vector<3x32xf32> -> vector<64x32xf32>
    %c3 = arith.constant 3 : index
    %c0_10 = arith.constant 0 : index
    %c0_11 = arith.constant 0 : index
    %21 = vector.load %arg2[%c3, %c0_10, %c0_11] : memref<5x32x168xf32, #tpu.memory_space<vmem>>, vector<1x32x168xf32>
    %22 = vector.shape_cast %21 : vector<1x32x168xf32> to vector<32x168xf32>
    %cst_12 = arith.constant dense<0.000000e+00> : vector<64x168xf32>
    %23 = tpu.matmul %20, %22, %cst_12 {dimension_numbers = #tpu.dot_dimension_numbers<[1], [0], [0], [1], [0, 0, 1, 1], [], []>} : vector<64x32xf32>, vector<32x168xf32>, vector<64x168xf32> -> vector<64x168xf32>
    %24 = arith.addf %17, %23 : vector<64x168xf32>
    %25 = vector.extract_strided_slice %0 {offsets = [4, 0], sizes = [60, 32], strides = [1, 1]} : vector<64x32xf32> to vector<60x32xf32>
    %26 = vector.extract_strided_slice %0 {offsets = [0, 0], sizes = [4, 32], strides = [1, 1]} : vector<64x32xf32> to vector<4x32xf32>
    %27 = tpu.concatenate %25, %26 in 0 : vector<60x32xf32>, vector<4x32xf32> -> vector<64x32xf32>
    %c4 = arith.constant 4 : index
    %c0_13 = arith.constant 0 : index
    %c0_14 = arith.constant 0 : index
    %28 = vector.load %arg2[%c4, %c0_13, %c0_14] : memref<5x32x168xf32, #tpu.memory_space<vmem>>, vector<1x32x168xf32>
    %29 = vector.shape_cast %28 : vector<1x32x168xf32> to vector<32x168xf32>
    %cst_15 = arith.constant dense<0.000000e+00> : vector<64x168xf32>
    %30 = tpu.matmul %27, %29, %cst_15 {dimension_numbers = #tpu.dot_dimension_numbers<[1], [0], [0], [1], [0, 0, 1, 1], [], []>} : vector<64x32xf32>, vector<32x168xf32>, vector<64x168xf32> -> vector<64x168xf32>
    %31 = arith.addf %24, %30 : vector<64x168xf32>
    %c0_16 = arith.constant 0 : index
    %c0_17 = arith.constant 0 : index
    %32 = vector.load %arg3[%c0_16, %c0_17] : memref<1x168xf32, #tpu.memory_space<vmem>>, vector<1x168xf32>
    %33 = vector.broadcast %32 : vector<1x168xf32> to vector<64x168xf32>
    %34 = arith.addf %31, %33 : vector<64x168xf32>
    %35 = math.tanh %34 : vector<64x168xf32>
    %c0_18 = arith.constant 0 : index
    %c0_19 = arith.constant 0 : index
    %36 = vector.load %arg4[%c0_18, %c0_19] : memref<28x64xf32, #tpu.memory_space<vmem>>, vector<28x64xf32>
    %cst_20 = arith.constant dense<0.000000e+00> : vector<28x168xf32>
    %37 = tpu.matmul %36, %35, %cst_20 {dimension_numbers = #tpu.dot_dimension_numbers<[1], [0], [0], [1], [0, 0, 1, 1], [], []>} : vector<28x64xf32>, vector<64x168xf32>, vector<28x168xf32> -> vector<28x168xf32>
    %c0_21 = arith.constant 0 : index
    %c0_22 = arith.constant 0 : index
    %38 = vector.load %arg5[%c0_21, %c0_22] : memref<168x84xf32, #tpu.memory_space<vmem>>, vector<168x84xf32>
    %cst_23 = arith.constant dense<0.000000e+00> : vector<28x84xf32>
    %39 = tpu.matmul %37, %38, %cst_23 {dimension_numbers = #tpu.dot_dimension_numbers<[1], [0], [0], [1], [0, 0, 1, 1], [], []>} : vector<28x168xf32>, vector<168x84xf32>, vector<28x84xf32> -> vector<28x84xf32>
    %c0_24 = arith.constant 0 : index
    %c0_25 = arith.constant 0 : index
    %c0_26 = arith.constant 0 : index
    %40 = vector.load %arg6[%c0_24, %c0_25, %c0_26] : memref<5x84x160xf32, #tpu.memory_space<vmem>>, vector<1x84x160xf32>
    %41 = vector.shape_cast %40 : vector<1x84x160xf32> to vector<84x160xf32>
    %cst_27 = arith.constant dense<0.000000e+00> : vector<28x160xf32>
    %42 = tpu.matmul %39, %41, %cst_27 {dimension_numbers = #tpu.dot_dimension_numbers<[1], [0], [0], [1], [0, 0, 1, 1], [], []>} : vector<28x84xf32>, vector<84x160xf32>, vector<28x160xf32> -> vector<28x160xf32>
    %43 = vector.extract_strided_slice %39 {offsets = [1, 0], sizes = [27, 84], strides = [1, 1]} : vector<28x84xf32> to vector<27x84xf32>
    %44 = vector.extract_strided_slice %39 {offsets = [0, 0], sizes = [1, 84], strides = [1, 1]} : vector<28x84xf32> to vector<1x84xf32>
    %45 = tpu.concatenate %43, %44 in 0 : vector<27x84xf32>, vector<1x84xf32> -> vector<28x84xf32>
    %c1_28 = arith.constant 1 : index
    %c0_29 = arith.constant 0 : index
    %c0_30 = arith.constant 0 : index
    %46 = vector.load %arg6[%c1_28, %c0_29, %c0_30] : memref<5x84x160xf32, #tpu.memory_space<vmem>>, vector<1x84x160xf32>
    %47 = vector.shape_cast %46 : vector<1x84x160xf32> to vector<84x160xf32>
    %cst_31 = arith.constant dense<0.000000e+00> : vector<28x160xf32>
    %48 = tpu.matmul %45, %47, %cst_31 {dimension_numbers = #tpu.dot_dimension_numbers<[1], [0], [0], [1], [0, 0, 1, 1], [], []>} : vector<28x84xf32>, vector<84x160xf32>, vector<28x160xf32> -> vector<28x160xf32>
    %49 = arith.addf %42, %48 : vector<28x160xf32>
    %50 = vector.extract_strided_slice %39 {offsets = [2, 0], sizes = [26, 84], strides = [1, 1]} : vector<28x84xf32> to vector<26x84xf32>
    %51 = vector.extract_strided_slice %39 {offsets = [0, 0], sizes = [2, 84], strides = [1, 1]} : vector<28x84xf32> to vector<2x84xf32>
    %52 = tpu.concatenate %50, %51 in 0 : vector<26x84xf32>, vector<2x84xf32> -> vector<28x84xf32>
    %c2_32 = arith.constant 2 : index
    %c0_33 = arith.constant 0 : index
    %c0_34 = arith.constant 0 : index
    %53 = vector.load %arg6[%c2_32, %c0_33, %c0_34] : memref<5x84x160xf32, #tpu.memory_space<vmem>>, vector<1x84x160xf32>
    %54 = vector.shape_cast %53 : vector<1x84x160xf32> to vector<84x160xf32>
    %cst_35 = arith.constant dense<0.000000e+00> : vector<28x160xf32>
    %55 = tpu.matmul %52, %54, %cst_35 {dimension_numbers = #tpu.dot_dimension_numbers<[1], [0], [0], [1], [0, 0, 1, 1], [], []>} : vector<28x84xf32>, vector<84x160xf32>, vector<28x160xf32> -> vector<28x160xf32>
    %56 = arith.addf %49, %55 : vector<28x160xf32>
    %57 = vector.extract_strided_slice %39 {offsets = [3, 0], sizes = [25, 84], strides = [1, 1]} : vector<28x84xf32> to vector<25x84xf32>
    %58 = vector.extract_strided_slice %39 {offsets = [0, 0], sizes = [3, 84], strides = [1, 1]} : vector<28x84xf32> to vector<3x84xf32>
    %59 = tpu.concatenate %57, %58 in 0 : vector<25x84xf32>, vector<3x84xf32> -> vector<28x84xf32>
    %c3_36 = arith.constant 3 : index
    %c0_37 = arith.constant 0 : index
    %c0_38 = arith.constant 0 : index
    %60 = vector.load %arg6[%c3_36, %c0_37, %c0_38] : memref<5x84x160xf32, #tpu.memory_space<vmem>>, vector<1x84x160xf32>
    %61 = vector.shape_cast %60 : vector<1x84x160xf32> to vector<84x160xf32>
    %cst_39 = arith.constant dense<0.000000e+00> : vector<28x160xf32>
    %62 = tpu.matmul %59, %61, %cst_39 {dimension_numbers = #tpu.dot_dimension_numbers<[1], [0], [0], [1], [0, 0, 1, 1], [], []>} : vector<28x84xf32>, vector<84x160xf32>, vector<28x160xf32> -> vector<28x160xf32>
    %63 = arith.addf %56, %62 : vector<28x160xf32>
    %64 = vector.extract_strided_slice %39 {offsets = [4, 0], sizes = [24, 84], strides = [1, 1]} : vector<28x84xf32> to vector<24x84xf32>
    %65 = vector.extract_strided_slice %39 {offsets = [0, 0], sizes = [4, 84], strides = [1, 1]} : vector<28x84xf32> to vector<4x84xf32>
    %66 = tpu.concatenate %64, %65 in 0 : vector<24x84xf32>, vector<4x84xf32> -> vector<28x84xf32>
    %c4_40 = arith.constant 4 : index
    %c0_41 = arith.constant 0 : index
    %c0_42 = arith.constant 0 : index
    %67 = vector.load %arg6[%c4_40, %c0_41, %c0_42] : memref<5x84x160xf32, #tpu.memory_space<vmem>>, vector<1x84x160xf32>
    %68 = vector.shape_cast %67 : vector<1x84x160xf32> to vector<84x160xf32>
    %cst_43 = arith.constant dense<0.000000e+00> : vector<28x160xf32>
    %69 = tpu.matmul %66, %68, %cst_43 {dimension_numbers = #tpu.dot_dimension_numbers<[1], [0], [0], [1], [0, 0, 1, 1], [], []>} : vector<28x84xf32>, vector<84x160xf32>, vector<28x160xf32> -> vector<28x160xf32>
    %70 = arith.addf %63, %69 : vector<28x160xf32>
    %c0_44 = arith.constant 0 : index
    %c0_45 = arith.constant 0 : index
    %71 = vector.load %arg7[%c0_44, %c0_45] : memref<1x160xf32, #tpu.memory_space<vmem>>, vector<1x160xf32>
    %72 = vector.broadcast %71 : vector<1x160xf32> to vector<28x160xf32>
    %73 = arith.addf %70, %72 : vector<28x160xf32>
    %74 = math.tanh %73 : vector<28x160xf32>
    %c0_46 = arith.constant 0 : index
    %c0_47 = arith.constant 0 : index
    %75 = vector.load %arg8[%c0_46, %c0_47] : memref<160x80xf32, #tpu.memory_space<vmem>>, vector<160x80xf32>
    %cst_48 = arith.constant dense<0.000000e+00> : vector<28x80xf32>
    %76 = tpu.matmul %74, %75, %cst_48 {dimension_numbers = #tpu.dot_dimension_numbers<[1], [0], [0], [1], [0, 0, 1, 1], [], []>} : vector<28x160xf32>, vector<160x80xf32>, vector<28x80xf32> -> vector<28x80xf32>
    %c0_49 = arith.constant 0 : index
    %c0_50 = arith.constant 0 : index
    %c0_51 = arith.constant 0 : index
    %77 = vector.load %arg9[%c0_49, %c0_50, %c0_51] : memref<5x2x28xf32, #tpu.memory_space<vmem>>, vector<1x2x28xf32>
    %78 = vector.shape_cast %77 : vector<1x2x28xf32> to vector<2x28xf32>
    %cst_52 = arith.constant dense<0.000000e+00> : vector<2x80xf32>
    %79 = tpu.matmul %78, %76, %cst_52 {dimension_numbers = #tpu.dot_dimension_numbers<[1], [0], [0], [1], [0, 0, 1, 1], [], []>} : vector<2x28xf32>, vector<28x80xf32>, vector<2x80xf32> -> vector<2x80xf32>
    %c0_53 = arith.constant 0 : index
    %c0_54 = arith.constant 0 : index
    %c0_55 = arith.constant 0 : index
    %80 = vector.load %arg10[%c0_53, %c0_54, %c0_55] : memref<5x80x120xf32, #tpu.memory_space<vmem>>, vector<1x80x120xf32>
    %81 = vector.shape_cast %80 : vector<1x80x120xf32> to vector<80x120xf32>
    %cst_56 = arith.constant dense<0.000000e+00> : vector<2x120xf32>
    %82 = tpu.matmul %79, %81, %cst_56 {dimension_numbers = #tpu.dot_dimension_numbers<[1], [0], [0], [1], [0, 0, 1, 1], [], []>} : vector<2x80xf32>, vector<80x120xf32>, vector<2x120xf32> -> vector<2x120xf32>
    %c1_57 = arith.constant 1 : index
    %c0_58 = arith.constant 0 : index
    %c0_59 = arith.constant 0 : index
    %83 = vector.load %arg9[%c1_57, %c0_58, %c0_59] : memref<5x2x28xf32, #tpu.memory_space<vmem>>, vector<1x2x28xf32>
    %84 = vector.shape_cast %83 : vector<1x2x28xf32> to vector<2x28xf32>
    %cst_60 = arith.constant dense<0.000000e+00> : vector<2x80xf32>
    %85 = tpu.matmul %84, %76, %cst_60 {dimension_numbers = #tpu.dot_dimension_numbers<[1], [0], [0], [1], [0, 0, 1, 1], [], []>} : vector<2x28xf32>, vector<28x80xf32>, vector<2x80xf32> -> vector<2x80xf32>
    %c1_61 = arith.constant 1 : index
    %c0_62 = arith.constant 0 : index
    %c0_63 = arith.constant 0 : index
    %86 = vector.load %arg10[%c1_61, %c0_62, %c0_63] : memref<5x80x120xf32, #tpu.memory_space<vmem>>, vector<1x80x120xf32>
    %87 = vector.shape_cast %86 : vector<1x80x120xf32> to vector<80x120xf32>
    %cst_64 = arith.constant dense<0.000000e+00> : vector<2x120xf32>
    %88 = tpu.matmul %85, %87, %cst_64 {dimension_numbers = #tpu.dot_dimension_numbers<[1], [0], [0], [1], [0, 0, 1, 1], [], []>} : vector<2x80xf32>, vector<80x120xf32>, vector<2x120xf32> -> vector<2x120xf32>
    %89 = arith.addf %82, %88 : vector<2x120xf32>
    %c2_65 = arith.constant 2 : index
    %c0_66 = arith.constant 0 : index
    %c0_67 = arith.constant 0 : index
    %90 = vector.load %arg9[%c2_65, %c0_66, %c0_67] : memref<5x2x28xf32, #tpu.memory_space<vmem>>, vector<1x2x28xf32>
    %91 = vector.shape_cast %90 : vector<1x2x28xf32> to vector<2x28xf32>
    %cst_68 = arith.constant dense<0.000000e+00> : vector<2x80xf32>
    %92 = tpu.matmul %91, %76, %cst_68 {dimension_numbers = #tpu.dot_dimension_numbers<[1], [0], [0], [1], [0, 0, 1, 1], [], []>} : vector<2x28xf32>, vector<28x80xf32>, vector<2x80xf32> -> vector<2x80xf32>
    %c2_69 = arith.constant 2 : index
    %c0_70 = arith.constant 0 : index
    %c0_71 = arith.constant 0 : index
    %93 = vector.load %arg10[%c2_69, %c0_70, %c0_71] : memref<5x80x120xf32, #tpu.memory_space<vmem>>, vector<1x80x120xf32>
    %94 = vector.shape_cast %93 : vector<1x80x120xf32> to vector<80x120xf32>
    %cst_72 = arith.constant dense<0.000000e+00> : vector<2x120xf32>
    %95 = tpu.matmul %92, %94, %cst_72 {dimension_numbers = #tpu.dot_dimension_numbers<[1], [0], [0], [1], [0, 0, 1, 1], [], []>} : vector<2x80xf32>, vector<80x120xf32>, vector<2x120xf32> -> vector<2x120xf32>
    %96 = arith.addf %89, %95 : vector<2x120xf32>
    %c3_73 = arith.constant 3 : index
    %c0_74 = arith.constant 0 : index
    %c0_75 = arith.constant 0 : index
    %97 = vector.load %arg9[%c3_73, %c0_74, %c0_75] : memref<5x2x28xf32, #tpu.memory_space<vmem>>, vector<1x2x28xf32>
    %98 = vector.shape_cast %97 : vector<1x2x28xf32> to vector<2x28xf32>
    %cst_76 = arith.constant dense<0.000000e+00> : vector<2x80xf32>
    %99 = tpu.matmul %98, %76, %cst_76 {dimension_numbers = #tpu.dot_dimension_numbers<[1], [0], [0], [1], [0, 0, 1, 1], [], []>} : vector<2x28xf32>, vector<28x80xf32>, vector<2x80xf32> -> vector<2x80xf32>
    %c3_77 = arith.constant 3 : index
    %c0_78 = arith.constant 0 : index
    %c0_79 = arith.constant 0 : index
    %100 = vector.load %arg10[%c3_77, %c0_78, %c0_79] : memref<5x80x120xf32, #tpu.memory_space<vmem>>, vector<1x80x120xf32>
    %101 = vector.shape_cast %100 : vector<1x80x120xf32> to vector<80x120xf32>
    %cst_80 = arith.constant dense<0.000000e+00> : vector<2x120xf32>
    %102 = tpu.matmul %99, %101, %cst_80 {dimension_numbers = #tpu.dot_dimension_numbers<[1], [0], [0], [1], [0, 0, 1, 1], [], []>} : vector<2x80xf32>, vector<80x120xf32>, vector<2x120xf32> -> vector<2x120xf32>
    %103 = arith.addf %96, %102 : vector<2x120xf32>
    %c4_81 = arith.constant 4 : index
    %c0_82 = arith.constant 0 : index
    %c0_83 = arith.constant 0 : index
    %104 = vector.load %arg9[%c4_81, %c0_82, %c0_83] : memref<5x2x28xf32, #tpu.memory_space<vmem>>, vector<1x2x28xf32>
    %105 = vector.shape_cast %104 : vector<1x2x28xf32> to vector<2x28xf32>
    %cst_84 = arith.constant dense<0.000000e+00> : vector<2x80xf32>
    %106 = tpu.matmul %105, %76, %cst_84 {dimension_numbers = #tpu.dot_dimension_numbers<[1], [0], [0], [1], [0, 0, 1, 1], [], []>} : vector<2x28xf32>, vector<28x80xf32>, vector<2x80xf32> -> vector<2x80xf32>
    %c4_85 = arith.constant 4 : index
    %c0_86 = arith.constant 0 : index
    %c0_87 = arith.constant 0 : index
    %107 = vector.load %arg10[%c4_85, %c0_86, %c0_87] : memref<5x80x120xf32, #tpu.memory_space<vmem>>, vector<1x80x120xf32>
    %108 = vector.shape_cast %107 : vector<1x80x120xf32> to vector<80x120xf32>
    %cst_88 = arith.constant dense<0.000000e+00> : vector<2x120xf32>
    %109 = tpu.matmul %106, %108, %cst_88 {dimension_numbers = #tpu.dot_dimension_numbers<[1], [0], [0], [1], [0, 0, 1, 1], [], []>} : vector<2x80xf32>, vector<80x120xf32>, vector<2x120xf32> -> vector<2x120xf32>
    %110 = arith.addf %103, %109 : vector<2x120xf32>
    %c0_89 = arith.constant 0 : index
    %c0_90 = arith.constant 0 : index
    %111 = vector.load %arg11[%c0_89, %c0_90] : memref<1x120xf32, #tpu.memory_space<vmem>>, vector<1x120xf32>
    %112 = vector.broadcast %111 : vector<1x120xf32> to vector<2x120xf32>
    %113 = arith.addf %110, %112 : vector<2x120xf32>
    %114 = math.tanh %113 : vector<2x120xf32>
    %c0_91 = arith.constant 0 : index
    %c0_92 = arith.constant 0 : index
    %115 = vector.load %arg12[%c0_91, %c0_92] : memref<120x84xf32, #tpu.memory_space<vmem>>, vector<120x84xf32>
    %cst_93 = arith.constant dense<0.000000e+00> : vector<2x84xf32>
    %116 = tpu.matmul %114, %115, %cst_93 {dimension_numbers = #tpu.dot_dimension_numbers<[1], [0], [0], [1], [0, 0, 1, 1], [], []>} : vector<2x120xf32>, vector<120x84xf32>, vector<2x84xf32> -> vector<2x84xf32>
    %c0_94 = arith.constant 0 : index
    %c0_95 = arith.constant 0 : index
    %117 = vector.load %arg13[%c0_94, %c0_95] : memref<1x84xf32, #tpu.memory_space<vmem>>, vector<1x84xf32>
    %118 = vector.broadcast %117 : vector<1x84xf32> to vector<2x84xf32>
    %119 = arith.addf %116, %118 : vector<2x84xf32>
    %120 = math.tanh %119 : vector<2x84xf32>
    %c0_96 = arith.constant 0 : index
    %c0_97 = arith.constant 0 : index
    %121 = vector.load %arg14[%c0_96, %c0_97] : memref<84x128xf32, #tpu.memory_space<vmem>>, vector<84x128xf32>
    %cst_98 = arith.constant dense<0.000000e+00> : vector<2x128xf32>
    %122 = tpu.matmul %120, %121, %cst_98 {dimension_numbers = #tpu.dot_dimension_numbers<[1], [0], [0], [1], [0, 0, 1, 1], [], []>} : vector<2x84xf32>, vector<84x128xf32>, vector<2x128xf32> -> vector<2x128xf32>
    %c0_99 = arith.constant 0 : index
    %c0_100 = arith.constant 0 : index
    %123 = vector.load %arg15[%c0_99, %c0_100] : memref<1x128xf32, #tpu.memory_space<vmem>>, vector<1x128xf32>
    %124 = vector.broadcast %123 : vector<1x128xf32> to vector<2x128xf32>
    %125 = arith.addf %122, %124 : vector<2x128xf32>
    %c0_101 = arith.constant 0 : index
    %c0_102 = arith.constant 0 : index
    %126 = vector.load %arg16[%c0_101, %c0_102] : memref<2x128xf32, #tpu.memory_space<vmem>>, vector<2x128xf32>
    tpu.vector_store %arg16[%c0_101, %c0_102], %125 {strides = array<i32>} : memref<2x128xf32, #tpu.memory_space<vmem>>, vector<2x128xf32>,
    return
  }
  func.func @transform_0(%arg0: i32) -> (i32, i32) {
    %c0_i32 = arith.constant 0 : i32
    %c0_i32_0 = arith.constant 0 : i32
    return %arg0, %c0_i32 : i32, i32
  }
  func.func @transform_1(%arg0: i32) -> (i32, i32, i32) {
    %c0_i32 = arith.constant 0 : i32
    %c0_i32_0 = arith.constant 0 : i32
    %c0_i32_1 = arith.constant 0 : i32
    %c0_i32_2 = arith.constant 0 : i32
    return %c0_i32, %c0_i32_0, %c0_i32_1 : i32, i32, i32
  }
  func.func @transform_2(%arg0: i32) -> (i32, i32) {
    %c0_i32 = arith.constant 0 : i32
    %c0_i32_0 = arith.constant 0 : i32
    %c0_i32_1 = arith.constant 0 : i32
    return %c0_i32, %c0_i32_0 : i32, i32
  }
  func.func @transform_3(%arg0: i32) -> (i32, i32) {
    %c0_i32 = arith.constant 0 : i32
    %c0_i32_0 = arith.constant 0 : i32
    %c0_i32_1 = arith.constant 0 : i32
    return %c0_i32, %c0_i32_0 : i32, i32
  }
  func.func @transform_4(%arg0: i32) -> (i32, i32) {
    %c0_i32 = arith.constant 0 : i32
    %c0_i32_0 = arith.constant 0 : i32
    %c0_i32_1 = arith.constant 0 : i32
    return %c0_i32, %c0_i32_0 : i32, i32
  }
  func.func @transform_5(%arg0: i32) -> (i32, i32, i32) {
    %c0_i32 = arith.constant 0 : i32
    %c0_i32_0 = arith.constant 0 : i32
    %c0_i32_1 = arith.constant 0 : i32
    %c0_i32_2 = arith.constant 0 : i32
    return %c0_i32, %c0_i32_0, %c0_i32_1 : i32, i32, i32
  }
  func.func @transform_6(%arg0: i32) -> (i32, i32) {
    %c0_i32 = arith.constant 0 : i32
    %c0_i32_0 = arith.constant 0 : i32
    %c0_i32_1 = arith.constant 0 : i32
    return %c0_i32, %c0_i32_0 : i32, i32
  }
  func.func @transform_7(%arg0: i32) -> (i32, i32) {
    %c0_i32 = arith.constant 0 : i32
    %c0_i32_0 = arith.constant 0 : i32
    %c0_i32_1 = arith.constant 0 : i32
    return %c0_i32, %c0_i32_0 : i32, i32
  }
  func.func @transform_8(%arg0: i32) -> (i32, i32, i32) {
    %c0_i32 = arith.constant 0 : i32
    %c0_i32_0 = arith.constant 0 : i32
    %c0_i32_1 = arith.constant 0 : i32
    %c0_i32_2 = arith.constant 0 : i32
    return %c0_i32, %c0_i32_0, %c0_i32_1 : i32, i32, i32
  }
  func.func @transform_9(%arg0: i32) -> (i32, i32, i32) {
    %c0_i32 = arith.constant 0 : i32
    %c0_i32_0 = arith.constant 0 : i32
    %c0_i32_1 = arith.constant 0 : i32
    %c0_i32_2 = arith.constant 0 : i32
    return %c0_i32, %c0_i32_0, %c0_i32_1 : i32, i32, i32
  }
  func.func @transform_10(%arg0: i32) -> (i32, i32) {
    %c0_i32 = arith.constant 0 : i32
    %c0_i32_0 = arith.constant 0 : i32
    %c0_i32_1 = arith.constant 0 : i32
    return %c0_i32, %c0_i32_0 : i32, i32
  }
  func.func @transform_11(%arg0: i32) -> (i32, i32) {
    %c0_i32 = arith.constant 0 : i32
    %c0_i32_0 = arith.constant 0 : i32
    %c0_i32_1 = arith.constant 0 : i32
    return %c0_i32, %c0_i32_0 : i32, i32
  }
  func.func @transform_12(%arg0: i32) -> (i32, i32) {
    %c0_i32 = arith.constant 0 : i32
    %c0_i32_0 = arith.constant 0 : i32
    %c0_i32_1 = arith.constant 0 : i32
    return %c0_i32, %c0_i32_0 : i32, i32
  }
  func.func @transform_13(%arg0: i32) -> (i32, i32) {
    %c0_i32 = arith.constant 0 : i32
    %c0_i32_0 = arith.constant 0 : i32
    %c0_i32_1 = arith.constant 0 : i32
    return %c0_i32, %c0_i32_0 : i32, i32
  }
  func.func @transform_14(%arg0: i32) -> (i32, i32) {
    %c0_i32 = arith.constant 0 : i32
    %c0_i32_0 = arith.constant 0 : i32
    %c0_i32_1 = arith.constant 0 : i32
    return %c0_i32, %c0_i32_0 : i32, i32
  }
  func.func @transform_15(%arg0: i32) -> (i32, i32) {
    %c0_i32 = arith.constant 0 : i32
    %c0_i32_0 = arith.constant 0 : i32
    return %arg0, %c0_i32 : i32, i32
  }
}

</mosaic_0001>

<bundles_post_ra>
// kernel: tile.13
= control target key start
LH: loop header
LB: loop body
LE: loop exit
PB: predicated region body
PF: predicated region fallthrough
CT: control target
= control target key end

     0   :  { %s40_s0 = inlined_call_operand.vmem [shape: f32[6], index: 0, kind: input, shape index: {}]   ;;  %s41_s1 = inlined_call_operand.vmem [shape: f32[28,6], index: 1, kind: output, shape index: {}]  }
   0x1   :  { %v4_v0 = vld [vmem:[%s40_s0] ss:$0 sm:$0xff] }
   0x2   :  { %5 = vst [vmem:[%s41_s1] sm:$0xff] %v4_v0 }
   0x3   :  { %12 = vst [vmem:[%s41_s1 + $0x8] sm:$0xff] %v4_v0 }
   0x4   :  { %13 = vst [vmem:[%s41_s1 + $0x10] sm:$0xff] %v4_v0 }
   0x5   :  { %14 = vst [vmem:[%s41_s1 + $0x18] sm:$0xff] %v4_v0 }

// kernel: tile.14
= control target key start
LH: loop header
LB: loop body
LE: loop exit
PB: predicated region body
PF: predicated region fallthrough
CT: control target
= control target key end

     0   :  { %vm9_vm0 = vcmask 15360   ;;  %s248_s12 = smov 126   ;;  %s249_s13 = smov 114   ;;  %vm3_vm1 = vcmask 48128   ;;  %vm13_vm2 = vcmask 31744   ;;  %vm16_vm3 = vcmask 1048560   ;;  %s378_s0 = inlined_call_operand.vmem [shape: f32[28,6], index: 0, kind: input, shape index: {}]   ;;  %s379_s1 = inlined_call_operand.vmem [shape: f32[1,168], index: 1, kind: output, shape index: {}]  }
   0x1   :  { %v192_v0 = vld [vmem:[%s378_s0 + $0x15] sm:$0x1]   ;;  %v195_v3 = vld [vmem:[%s378_s0 + $0x13] sm:$0x1]   ;;  %v197_v4 = vld [vmem:[%s378_s0 + $0x11] sm:$0x1]  }
   0x2   :  { %v193_v1 = vld [vmem:[%s378_s0 + $0x15] sm:$0x1]   ;;  %26 = vrot.lane.b32.xlu1 %v195_v3, %s249_s13  ;;  %s250_s16 = smov 102   ;;  %v194_v5 = vld [vmem:[%s378_s0 + $0x14] sm:$0x1]   ;;  %s251_s21 = smov 120  }
   0x3   :  { %v10_v2 = vsel %vm9_vm0, %v193_v1, %v192_v0  ;;  %38 = vrot.lane.b32.xlu2 %v197_v4, %s250_s16  ;;  %v196_v6 = vld [vmem:[%s378_s0 + $0x12] sm:$0x1]   ;;  %s252_s22 = smov 108   ;;  %v198_v7 = vld [vmem:[%s378_s0 + $0x10] sm:$0x1]   ;;  %s253_s25 = smov 96  }
   0x4   :  { %11 = vrot.lane.b32.xlu0 %v10_v2, %s248_s12  ;;  %v199_v8 = vld [vmem:[%s378_s0 + $0xf] sm:$0x1]   ;;  %v200_v9 = vld [vmem:[%s378_s0 + $0xe] sm:$0x1]   ;;  %s254_s30 = smov 90   ;;  %s255_s2 = smov 84  }
   0x5   :  { %v201_v10 = vld [vmem:[%s378_s0 + $0xd] sm:$0x1]   ;;  %s256_s5 = smov 78   ;;  %v202_v11 = vld [vmem:[%s378_s0 + $0xc] sm:$0x1]   ;;  %s257_s10 = smov 72  }
   0x6   :  { %v203_v12 = vld [vmem:[%s378_s0 + $0xb] sm:$0x1]   ;;  %s258_s11 = smov 66   ;;  %v204_v13 = vld [vmem:[%s378_s0 + $0xa] sm:$0x1]   ;;  %s259_s14 = smov 60  }
   0x7   :  { %v205_v14 = vld [vmem:[%s378_s0 + $0x9] sm:$0x1]   ;;  %v206_v15 = vld [vmem:[%s378_s0 + $0x8] sm:$0x1]   ;;  %s260_s19 = smov 54   ;;  %s261_s20 = smov 48  }
   0x8   :  { %v207_v16 = vld [vmem:[%s378_s0 + $0x7] sm:$0x1]   ;;  %s262_s23 = smov 42   ;;  %v208_v17 = vld [vmem:[%s378_s0 + $0x6] sm:$0x1]   ;;  %s263_s28 = smov 36  }
   0x9   :  { %v209_v18 = vld [vmem:[%s378_s0 + $0x1b] sm:$0x1]   ;;  %s264_s29 = smov 34   ;;  %v210_v19 = vld [vmem:[%s378_s0 + $0x5] sm:$0x1]   ;;  %s265_s3 = smov 30  }
   0xa   :  { %32 = vrot.lane.b32.xlu1 %v196_v6, %s252_s22  ;;  %v211_v20 = vld [vmem:[%s378_s0 + $0x1a] sm:$0x1]   ;;  %v212_v21 = vld [vmem:[%s378_s0 + $0x4] sm:$0x1]   ;;  %s266_s8 = smov 28   ;;  %s267_s9 = smov 24  }
   0xb   :  { %44 = vrot.lane.b32.xlu2 %v198_v7, %s253_s25  ;;  %v213_v22 = vld [vmem:[%s378_s0 + $0x19] sm:$0x1]   ;;  %s268_s12 = smov 22   ;;  %v214_v23 = vld [vmem:[%s378_s0 + $0x3] sm:$0x1]   ;;  %s269_s17 = smov 18  }
   0xc   :  { %20 = vrot.lane.b32.xlu0 %v194_v5, %s251_s21  ;;  %v215_v24 = vld [vmem:[%s378_s0 + $0x18] sm:$0x1]   ;;  %s270_s18 = smov 16   ;;  %v216_v25 = vld [vmem:[%s378_s0 + $0x2] sm:$0x1]   ;;  %s271_s21 = smov 12  }
   0xd   :  { %v217_v26 = vld [vmem:[%s378_s0 + $0x17] sm:$0x1]   ;;  %v218_v27 = vld [vmem:[%s378_s0 + $0x1] sm:$0x1]   ;;  %s272_s26 = smov 10   ;;  %s273_s27 = smov 6  }
   0xe   :  { %v219_v28 = vld [vmem:[%s378_s0 + $0x16] sm:$0x1]   ;;  %v2_v29 = vld [vmem:[%s378_s0] sm:$0x1]   ;;  %vm22_vm4 = vcmask 1032128   ;;  %vm28_vm5 = vcmask 982928  }
   0xf   :  { %4 = vst.msk [vmem:[#allocation0] sm:$0x1] %vm3_vm1, %v2_v29   ;;  %vm34_vm6 = vcmask 933728   ;;  %vm40_vm7 = vcmask 884528   ;;  %vm46_vm8 = vcmask 835328   ;;  %vm52_vm9 = vcmask 786128  }
  0x10   :  { %vm58_vm10 = vcmask 736928   ;;  %vm64_vm11 = vcmask 687728   ;;  %vm70_vm12 = vcmask 638528   ;;  %vm76_vm13 = vcmask 589328  }
  0x11   :  { %vm82_vm14 = vcmask 540128   ;;  %vm88_vm15 = vcmask 490928   ;;  %vm94_vm0 = vcmask 441728   ;;  %vm100_vm1 = vcmask 392528  }
  0x12   :  { %56 = vrot.lane.b32.xlu1 %v200_v9, %s255_s2 }
  0x13   :  { %62 = vrot.lane.b32.xlu2 %v201_v10, %s256_s5 }
  0x14   :  { %50 = vrot.lane.b32.xlu0 %v199_v8, %s254_s30  ;;  %s274_s30 = smov 4  }
  0x1a   :  { %74 = vrot.lane.b32.xlu1 %v203_v12, %s258_s11 }
  0x1b   :  { %80 = vrot.lane.b32.xlu2 %v204_v13, %s259_s14 }
  0x1c   :  { %68 = vrot.lane.b32.xlu0 %v202_v11, %s257_s10 }
  0x22   :  { %92 = vrot.lane.b32.xlu1 %v206_v15, %s261_s20 }
  0x23   :  { %98 = vrot.lane.b32.xlu2 %v207_v16, %s262_s23 }
  0x24   :  { %86 = vrot.lane.b32.xlu0 %v205_v14, %s260_s19 }
  0x2a   :  { %110 = vrot.lane.b32.xlu1 %v209_v18, %s264_s29 }
  0x2b   :  { %117 = vrot.lane.b32.xlu2 %v210_v19, %s265_s3 }
  0x2c   :  { %104 = vrot.lane.b32.xlu0 %v208_v17, %s263_s28 }
  0x32   :  { %130 = vrot.lane.b32.xlu1 %v212_v21, %s267_s9 }
  0x33   :  { %136 = vrot.lane.b32.xlu2 %v213_v22, %s268_s12 }
  0x34   :  { %123 = vrot.lane.b32.xlu0 %v211_v20, %s266_s8 }
  0x3a   :  { %149 = vrot.lane.b32.xlu1 %v215_v24, %s270_s18 }
  0x3b   :  { %156 = vrot.lane.b32.xlu2 %v216_v25, %s271_s21 }
  0x3c   :  { %143 = vrot.lane.b32.xlu0 %v214_v23, %s269_s17 }
  0x42   :  { %169 = vrot.lane.b32.xlu1 %v218_v27, %s273_s27 }
  0x43   :  { %175 = vrot.lane.b32.xlu2 %v219_v28, %s274_s30 }
  0x44   :  { %162 = vrot.lane.b32.xlu0 %v217_v26, %s272_s26 }
  0x5d   :  { %v39_v30 = vpop.permute.xlu2 %38  }
  0x65   :  { %v45_v31 = vpop.permute.xlu2 %44  }
  0x6d   :  { %v63_v32 = vpop.permute.xlu2 %62  }
  0x74   :  { %v27_v34 = vpop.permute.xlu1 %26  }
  0x75   :  { %v81_v35 = vpop.permute.xlu2 %80  }
  0x76   :  { %v12_v33 = vpop.permute.xlu0 %11  }
  0x77   :  { %15 = vst.msk [vmem:[#allocation0 + $0x8] sm:$0x1] %vm13_vm2, %v12_v33   ;;  %vm106_vm2 = vcmask 343328  }
  0x78   :  { %17 = vst.msk [vmem:[#allocation0] sm:$0x1] %vm16_vm3, %v12_v33   ;;  %vm119_vm3 = vcmask 294128  }
  0x7c   :  { %v33_v37 = vpop.permute.xlu1 %32  }
  0x7d   :  { %v99_v38 = vpop.permute.xlu2 %98  }
  0x7e   :  { %v21_v36 = vpop.permute.xlu0 %20  }
  0x7f   :  { %23 = vst.msk [vmem:[#allocation0] sm:$0x1] %vm22_vm4, %v21_v36   ;;  %vm112_vm4 = vcmask 326928  }
  0x80   :  { %29 = vst.msk [vmem:[#allocation0] sm:$0x1] %vm28_vm5, %v27_v34   ;;  %vm125_vm5 = vcmask 277728  }
  0x81   :  { %35 = vst.msk [vmem:[#allocation0] sm:$0x1] %vm34_vm6, %v33_v37   ;;  %vm138_vm6 = vcmask 228528  }
  0x82   :  { %41 = vst.msk [vmem:[#allocation0] sm:$0x1] %vm40_vm7, %v39_v30   ;;  %vm132_vm7 = vcmask 244928  }
  0x83   :  { %47 = vst.msk [vmem:[#allocation0] sm:$0x1] %vm46_vm8, %v45_v31   ;;  %vm145_vm8 = vcmask 195728  }
  0x84   :  { %v57_v40 = vpop.permute.xlu1 %56  }
  0x85   :  { %v118_v41 = vpop.permute.xlu2 %117  }
  0x86   :  { %v51_v39 = vpop.permute.xlu0 %50  }
  0x87   :  { %53 = vst.msk [vmem:[#allocation0] sm:$0x1] %vm52_vm9, %v51_v39   ;;  %vm158_vm9 = vcmask 146528  }
  0x88   :  { %59 = vst.msk [vmem:[#allocation0] sm:$0x1] %vm58_vm10, %v57_v40   ;;  %vm151_vm10 = vcmask 179328  }
  0x89   :  { %65 = vst.msk [vmem:[#allocation0] sm:$0x1] %vm64_vm11, %v63_v32   ;;  %vm164_vm11 = vcmask 130128  }
  0x8c   :  { %v75_v43 = vpop.permute.xlu1 %74  }
  0x8d   :  { %v137_v44 = vpop.permute.xlu2 %136  }
  0x8e   :  { %v69_v42 = vpop.permute.xlu0 %68  }
  0x8f   :  { %71 = vst.msk [vmem:[#allocation0] sm:$0x1] %vm70_vm12, %v69_v42   ;;  %vm177_vm12 = vcmask 80928  }
  0x90   :  { %77 = vst.msk [vmem:[#allocation0] sm:$0x1] %vm76_vm13, %v75_v43   ;;  %vm171_vm13 = vcmask 97328  }
  0x91   :  { %83 = vst.msk [vmem:[#allocation0] sm:$0x1] %vm82_vm14, %v81_v35  }
  0x94   :  { %v93_v46 = vpop.permute.xlu1 %92  }
  0x95   :  { %v157_v47 = vpop.permute.xlu2 %156  }
  0x96   :  { %v87_v45 = vpop.permute.xlu0 %86  }
  0x97   :  { %89 = vst.msk [vmem:[#allocation0] sm:$0x1] %vm88_vm15, %v87_v45  }
  0x98   :  { %95 = vst.msk [vmem:[#allocation0] sm:$0x1] %vm94_vm0, %v93_v46  }
  0x99   :  { %101 = vst.msk [vmem:[#allocation0] sm:$0x1] %vm100_vm1, %v99_v38  }
  0x9c   :  { %v111_v49 = vpop.permute.xlu1 %110  }
  0x9d   :  { %114 = vst.msk [vmem:[#allocation0 + $0x8] sm:$0x1] %vm112_vm4, %v111_v49   ;;  %v176_v50 = vpop.permute.xlu2 %175  }
  0x9e   :  { %v105_v48 = vpop.permute.xlu0 %104  }
  0x9f   :  { %107 = vst.msk [vmem:[#allocation0] sm:$0x1] %vm106_vm2, %v105_v48  }
  0xa0   :  { %120 = vst.msk [vmem:[#allocation0] sm:$0x1] %vm119_vm3, %v118_v41  }
  0xa4   :  { %v131_v52 = vpop.permute.xlu1 %130  }
  0xa5   :  { %133 = vst.msk [vmem:[#allocation0] sm:$0x1] %vm132_vm7, %v131_v52  }
  0xa6   :  { %v124_v51 = vpop.permute.xlu0 %123  }
  0xa7   :  { %127 = vst.msk [vmem:[#allocation0 + $0x8] sm:$0x1] %vm125_vm5, %v124_v51  }
  0xa8   :  { %140 = vst.msk [vmem:[#allocation0 + $0x8] sm:$0x1] %vm138_vm6, %v137_v44  }
  0xac   :  { %v150_v54 = vpop.permute.xlu1 %149  }
  0xad   :  { %153 = vst.msk [vmem:[#allocation0 + $0x8] sm:$0x1] %vm151_vm10, %v150_v54  }
  0xae   :  { %v144_v53 = vpop.permute.xlu0 %143  }
  0xaf   :  { %146 = vst.msk [vmem:[#allocation0] sm:$0x1] %vm145_vm8, %v144_v53  }
  0xb0   :  { %159 = vst.msk [vmem:[#allocation0] sm:$0x1] %vm158_vm9, %v157_v47  }
  0xb4   :  { %v170_v56 = vpop.permute.xlu1 %169  }
  0xb5   :  { %172 = vst.msk [vmem:[#allocation0] sm:$0x1] %vm171_vm13, %v170_v56  }
  0xb6   :  { %v163_v55 = vpop.permute.xlu0 %162  }
  0xb7   :  { %166 = vst.msk [vmem:[#allocation0 + $0x8] sm:$0x1] %vm164_vm11, %v163_v55  }
  0xb8   :  { %179 = vst.msk [vmem:[#allocation0 + $0x8] sm:$0x1] %vm177_vm12, %v176_v50  }
  0xbc   :  { %v182_v58 = vld [vmem:[#allocation0] sm:$0x1] }
  0xbd   :  { %185 = vst [vmem:[%s379_s1] sm:$0x1] %v182_v58 }
  0xbf   :  { %v187_v57 = vld [vmem:[#allocation0 + $0x8] sm:$0x1] }
  0xc0   :  { %220 = vst [vmem:[%s379_s1 + $0x1] sm:$0x1] %v187_v57 }

// kernel: tile.18
= control target key start
LH: loop header
LB: loop body
LE: loop exit
PB: predicated region body
PF: predicated region fallthrough
CT: control target
= control target key end

     0   :  { %s28_s0 = inlined_call_operand.vmem [shape: f32[16], index: 0, kind: input, shape index: {}]   ;;  %s29_s1 = inlined_call_operand.vmem [shape: f32[10,16], index: 1, kind: output, shape index: {}]  }
   0x1   :  { %v4_v0 = vld [vmem:[%s28_s0] ss:$0 sm:$0xff] }
   0x2   :  { %5 = vst [vmem:[%s29_s1] sm:$0xff] %v4_v0 }
   0x3   :  { %8 = vst [vmem:[%s29_s1 + $0x8] sm:$0xff] %v4_v0 }

// kernel: tile.19
= control target key start
LH: loop header
LB: loop body
LE: loop exit
PB: predicated region body
PF: predicated region fallthrough
CT: control target
= control target key end

     0   :  { %s76_s10 = smov 112   ;;  %s77_s11 = smov 80   ;;  %vm4_vm0 = vcmask 130048   ;;  %vm10_vm1 = vcmask 1048448   ;;  %vm16_vm2 = vcmask 917248   ;;  %vm22_vm3 = vcmask 786048   ;;  %s123_s0 = inlined_call_operand.vmem [shape: f32[10,16], index: 0, kind: input, shape index: {}]   ;;  %s124_s1 = inlined_call_operand.vmem [shape: f32[1,160], index: 1, kind: output, shape index: {}]  }
   0x1   :  { %v61_v0 = vld [vmem:[%s123_s0 + $0x7] sm:$0x1]   ;;  %v63_v1 = vld [vmem:[%s123_s0 + $0x5] sm:$0x1]   ;;  %v65_v2 = vld [vmem:[%s123_s0 + $0x3] sm:$0x1]  }
   0x2   :  { %8 = vrot.lane.b32.xlu0 %v61_v0, %s76_s10  ;;  %20 = vrot.lane.b32.xlu1 %v63_v1, %s77_s11  ;;  %s78_s14 = smov 48   ;;  %v62_v3 = vld [vmem:[%s123_s0 + $0x6] sm:$0x1]   ;;  %v64_v4 = vld [vmem:[%s123_s0 + $0x4] sm:$0x1]   ;;  %s79_s19 = smov 96  }
   0x3   :  { %32 = vrot.lane.b32.xlu2 %v65_v2, %s78_s14  ;;  %s80_s20 = smov 64   ;;  %v66_v5 = vld [vmem:[%s123_s0 + $0x2] sm:$0x1]   ;;  %s43_s23 = smov 3  ;;  %vm28_vm4 = vcmask 654848   ;;  %vm34_vm5 = vcmask 523648  }
   0x4   :  { %s81_s24 = smov 32   ;;  %v67_v6 = vld [vmem:[%s123_s0 + $0x1] ss:$8 sm:%s43_s23]   ;;  %s82_s27 = smov 16   ;;  %vm40_vm6 = vcmask 392448   ;;  %vm47_vm7 = vcmask 261248  }
   0x5   :  { %s2_s28 = smov 3 }
   0x6   :  { %v3_v7 = vld [vmem:[%s123_s0] ss:$8 sm:%s2_s28]  }
   0x7   :  { %5 = vst.msk [vmem:[#allocation0] ss:$8 sm:$0x3] %vm4_vm0, %v3_v7  }
   0xa   :  { %14 = vrot.lane.b32.xlu0 %v62_v3, %s79_s19  ;;  %26 = vrot.lane.b32.xlu1 %v64_v4, %s80_s20 }
   0xb   :  { %38 = vrot.lane.b32.xlu2 %v66_v5, %s81_s24 }
  0x12   :  { %45 = vrot.lane.b32.xlu0 %v67_v6, %s82_s27 }
  0x5d   :  { %v33_v8 = vpop.permute.xlu2 %32  }
  0x65   :  { %v39_v9 = vpop.permute.xlu2 %38  }
  0x74   :  { %v9_v10 = vpop.permute.xlu0 %8   ;;  %v21_v11 = vpop.permute.xlu1 %20  }
  0x75   :  { %11 = vst.msk [vmem:[#allocation0] sm:$0x1] %vm10_vm1, %v9_v10  }
  0x7c   :  { %v15_v12 = vpop.permute.xlu0 %14   ;;  %v27_v13 = vpop.permute.xlu1 %26  }
  0x7d   :  { %17 = vst.msk [vmem:[#allocation0] sm:$0x1] %vm16_vm2, %v15_v12  }
  0x7e   :  { %23 = vst.msk [vmem:[#allocation0] sm:$0x1] %vm22_vm3, %v21_v11  }
  0x7f   :  { %29 = vst.msk [vmem:[#allocation0] sm:$0x1] %vm28_vm4, %v27_v13  }
  0x80   :  { %35 = vst.msk [vmem:[#allocation0] sm:$0x1] %vm34_vm5, %v33_v8  }
  0x81   :  { %41 = vst.msk [vmem:[#allocation0] sm:$0x1] %vm40_vm6, %v39_v9  }
  0x84   :  { %v46_v14 = vpop.permute.xlu0 %45  }
  0x85   :  { %48 = vst.msk [vmem:[#allocation0] ss:$8 sm:$0x3] %vm47_vm7, %v46_v14  }
  0x8c   :  { %v51_v15 = vld [vmem:[#allocation0] sm:$0x1]  ;;  %v56_v16 = vld [vmem:[#allocation0 + $0x8] sm:$0x1] }
  0x8d   :  { %54 = vst [vmem:[%s124_s1] sm:$0x1] %v51_v15 }
  0x8e   :  { %68 = vst [vmem:[%s124_s1 + $0x1] sm:$0x1] %v56_v16 }

// kernel: _lambda_.1
= control target key start
LH: loop header
LB: loop body
LE: loop exit
PB: predicated region body
PF: predicated region fallthrough
CT: control target
= control target key end

     0   :  { %vm75_vm0 = vcmask 1046528   ;;  %vm103_vm1 = vcmask 261120   ;;  %s3919_s0 = inlined_call_operand.vmem [shape: f32[64,32], index: 0, kind: input, shape index: {}]   ;;  %s3920_s1 = inlined_call_operand.vmem [shape: f32[5,32,168], index: 1, kind: input, shape index: {}]   ;;  %s3921_s2 = inlined_call_operand.vmem [shape: f32[1,168], index: 2, kind: input, shape index: {}]   ;;  %s3922_s3 = inlined_call_operand.vmem [shape: f32[28,64], index: 3, kind: input, shape index: {}]   ;;  %s3923_s4 = inlined_call_operand.vmem [shape: f32[168,84], index: 4, kind: input, shape index: {}]   ;;  %s3924_s5 = inlined_call_operand.vmem [shape: f32[5,84,160], index: 5, kind: input, shape index: {}]   ;;  %s3925_s6 = inlined_call_operand.vmem [shape: f32[1,160], index: 6, kind: input, shape index: {}]   ;;  %s3926_s7 = inlined_call_operand.vmem [shape: f32[160,80], index: 7, kind: input, shape index: {}]   ;;  %s3927_s8 = inlined_call_operand.vmem [shape: f32[5,2,28], index: 8, kind: input, shape index: {}]   ;;  %s3928_s9 = inlined_call_operand.vmem [shape: f32[5,80,120], index: 9, kind: input, shape index: {}]   ;;  %s3929_s10 = inlined_call_operand.vmem [shape: f32[1,120], index: 10, kind: input, shape index: {}]   ;;  %s3930_s11 = inlined_call_operand.vmem [shape: f32[120,84], index: 11, kind: input, shape index: {}]   ;;  %s3931_s12 = inlined_call_operand.vmem [shape: f32[1,84], index: 12, kind: input, shape index: {}]   ;;  %s3932_s13 = inlined_call_operand.vmem [shape: f32[84,128], index: 13, kind: input, shape index: {}]   ;;  %s3933_s14 = inlined_call_operand.vmem [shape: f32[1,128], index: 14, kind: input, shape index: {}]   ;;  %s3934_s15 = inlined_call_operand.hbm [shape: f32[2,128], index: 15, kind: output, shape index: {}]  }
   0x1   :  { %v2009_v0 = vld [vmem:[%s3920_s1 + $0x70] sm:$0xff]  ;;  %v2010_v1 = vld [vmem:[%s3920_s1 + $0x78] sm:$0xff]  ;;  %v2007_v2 = vld [vmem:[%s3920_s1 + $0x60] sm:$0xff] }
   0x2   :  { %133 = vmatpush.msra.mxu0 %v2009_v0  ;;  %2331 = vmatpush.msra.mxu3 %v2009_v0  ;;  %v2008_v3 = vld [vmem:[%s3920_s1 + $0x68] sm:$0xff]  ;;  %v2005_v4 = vld [vmem:[%s3920_s1 + $0x50] sm:$0xff]  ;;  %v2520_v5 = vld [vmem:[%s3919_s0] sm:$0xff] }
   0x3   :  { %174 = vmatpush.msra.mxu1 %v2010_v1  ;;  %2335 = vmatpush.msra.mxu2 %v2010_v1  ;;  %v2006_v6 = vld [vmem:[%s3920_s1 + $0x58] sm:$0xff]  ;;  %v2528_v7 = vld [vmem:[%s3919_s0 + $0x8] sm:$0xff]  ;;  %v76_v8 = vrot.slane %v2520_v5, 1  ;;  %v2003_v10 = vld [vmem:[%s3920_s1 + $0x40] sm:$0xff] }
   0x4   :  { %134 = vmatpush.msra.mxu0 %v2007_v2  ;;  %2332 = vmatpush.msra.mxu3 %v2007_v2  ;;  %v2534_v9 = vld [vmem:[%s3919_s0 + $0x38] sm:$0xff]  ;;  %v77_v11 = vrot.slane %v2528_v7, 1  ;;  %v2004_v13 = vld [vmem:[%s3920_s1 + $0x48] sm:$0xff]  ;;  %v65_v16 = vld [vmem:[%s3920_s1 + $0x30] sm:$0xff] }
   0x5   :  { %175 = vmatpush.msra.mxu1 %v2008_v3  ;;  %2336 = vmatpush.msra.mxu2 %v2008_v3  ;;  %v89_v12 = vrot.slane %v2534_v9, 1  ;;  %v66_v17 = vld [vmem:[%s3920_s1 + $0x38] sm:$0xff]  ;;  %v2557_v18 = vld [vmem:[%s3919_s0 + $0x10] sm:$0xff] }
   0x6   :  { %135 = vmatpush.msra.mxu0 %v2005_v4  ;;  %2333 = vmatpush.msra.mxu3 %v2005_v4  ;;  %v78_v14 = vsel %vm75_vm0, %v76_v8, %v77_v11 }
   0x7   :  { %176 = vmatpush.msra.mxu1 %v2006_v6  ;;  %2337 = vmatpush.msra.mxu2 %v2006_v6  ;;  %v93_v15 = vsel %vm75_vm0, %v89_v12, %v76_v8 }
   0x8   :  { %136 = vmatpush.msra.mxu0 %v2003_v10  ;;  %2334 = vmatpush.msra.mxu3 %v2003_v10 }
   0x9   :  { %177 = vmatpush.msra.mxu1 %v2004_v13  ;;  %2338 = vmatpush.msra.mxu2 %v2004_v13 }
   0xa   :  { %2011 = vmatmul.msk.f32.vlgmr.msra.gmra.mxu0 %vm103_vm1, %v78_v14  ;;  %2018 = vmatmul.msk.f32.vlgmr.msra.gmra.mxu3 %vm103_vm1, %v93_v15 }
   0xb   :  { %20 = vsyncpa [#allocation3], 0  ;;  %2019 = vmatmul.msk.f32.vlgmr.msra.gmra.mxu1 %vm103_vm1, %v78_v14  ;;  %2026 = vmatmul.msk.f32.vlgmr.msra.gmra.mxu2 %vm103_vm1, %v93_v15  ;;  %v63_v19 = vld [vmem:[%s3920_s1 + $0x20] sm:$0xff]  ;;  %v64_v20 = vld [vmem:[%s3920_s1 + $0x28] sm:$0xff]  ;;  %v79_v21 = vrot.slane %v2557_v18, 1  ;;  %v302_v56 = vrot.slane %v2520_v5, 2 }
   0xc   :  { %231 = vmatpush.msrb.mxu2 %v65_v16  ;;  %272 = vmatpush.msrb.mxu3 %v66_v17  ;;  %v61_v22 = vld [vmem:[%s3920_s1 + $0x10] sm:$0xff]  ;;  %v62_v23 = vld [vmem:[%s3920_s1 + $0x18] sm:$0xff]  ;;  %v59_v24 = vld [vmem:[%s3920_s1] sm:$0xff]  ;;  %v303_v57 = vrot.slane %v2528_v7, 2  ;;  %vm301_vm2 = vcmask 1045504   ;;  %v305_v59 = vrot.slane %v2557_v18, 2 }
   0xd   :  { %v60_v25 = vld [vmem:[%s3920_s1 + $0x8] sm:$0xff]  ;;  %v80_v26 = vsel %vm75_vm0, %v77_v11, %v79_v21  ;;  %v2586_v27 = vld [vmem:[%s3919_s0 + $0x18] sm:$0xff]  ;;  %v2599_v30 = vld [vmem:[%s3919_s0 + $0x20] sm:$0xff]  ;;  %v445_v62 = vrot.slane %v2520_v5, 3  ;;  %v446_v63 = vrot.slane %v2528_v7, 3  ;;  %vm444_vm3 = vcmask 1044480  }
   0xe   :  { %232 = vmatpush.msrb.mxu2 %v63_v19  ;;  %273 = vmatpush.msrb.mxu3 %v64_v20  ;;  %v81_v28 = vrot.slane %v2586_v27, 1  ;;  %v83_v31 = vrot.slane %v2599_v30, 1  ;;  %v2049_v32 = vld [vmem:[%s3920_s1 + $0xb0] sm:$0xff]  ;;  %v2050_v33 = vld [vmem:[%s3920_s1 + $0xb8] sm:$0xff]  ;;  %v2047_v34 = vld [vmem:[%s3920_s1 + $0xa0] sm:$0xff]  ;;  %v304_v58 = vsel %vm301_vm2, %v302_v56, %v303_v57  ;;  %v306_v60 = vsel %vm301_vm2, %v303_v57, %v305_v59 }
   0xf   :  { %358 = vmatpush.msrb.mxu0 %v2049_v32  ;;  %399 = vmatpush.msrb.mxu1 %v2050_v33  ;;  %v2048_v35 = vld [vmem:[%s3920_s1 + $0xa8] sm:$0xff]  ;;  %v2045_v36 = vld [vmem:[%s3920_s1 + $0x90] sm:$0xff]  ;;  %v2046_v37 = vld [vmem:[%s3920_s1 + $0x98] sm:$0xff]  ;;  %v307_v61 = vrot.slane %v2586_v27, 2  ;;  %v447_v1 = vsel %vm444_vm3, %v445_v62, %v446_v63  ;;  %v309_v2 = vrot.slane %v2599_v30, 2  ;;  %v448_v6 = vrot.slane %v2557_v18, 3 }
  0x10   :  { %233 = vmatpush.msrb.mxu2 %v61_v22  ;;  %274 = vmatpush.msrb.mxu3 %v62_v23  ;;  %v82_v29 = vsel %vm75_vm0, %v79_v21, %v81_v28  ;;  %v84_v38 = vsel %vm75_vm0, %v81_v28, %v83_v31  ;;  %v2630_v39 = vld [vmem:[%s3919_s0 + $0x28] sm:$0xff]  ;;  %v2043_v40 = vld [vmem:[%s3920_s1 + $0x80] sm:$0xff]  ;;  %v2649_v44 = vld [vmem:[%s3919_s0 + $0x30] sm:$0xff]  ;;  %v450_v15 = vrot.slane %v2586_v27, 3  ;;  %v452_v23 = vrot.slane %v2599_v30, 3 }
  0x11   :  { %359 = vmatpush.msrb.mxu0 %v2047_v34  ;;  %400 = vmatpush.msrb.mxu1 %v2048_v35  ;;  %v2044_v41 = vld [vmem:[%s3920_s1 + $0x88] sm:$0xff]  ;;  %v85_v42 = vrot.slane %v2630_v39, 1  ;;  %v87_v45 = vrot.slane %v2649_v44, 1  ;;  %v2073_v46 = vld [vmem:[%s3920_s1 + $0xf0] sm:$0xff]  ;;  %v2074_v47 = vld [vmem:[%s3920_s1 + $0xf8] sm:$0xff]  ;;  %v308_v0 = vsel %vm301_vm2, %v305_v59, %v307_v61  ;;  %v310_v8 = vsel %vm301_vm2, %v307_v61, %v309_v2 }
  0x12   :  { %234 = vmatpush.msrb.mxu2 %v59_v24  ;;  %275 = vmatpush.msrb.mxu3 %v60_v25  ;;  %v2071_v48 = vld [vmem:[%s3920_s1 + $0xe0] sm:$0xff]  ;;  %v2072_v49 = vld [vmem:[%s3920_s1 + $0xe8] sm:$0xff]  ;;  %v2069_v50 = vld [vmem:[%s3920_s1 + $0xd0] sm:$0xff]  ;;  %v449_v10 = vsel %vm444_vm3, %v446_v63, %v448_v6  ;;  %v311_v11 = vrot.slane %v2630_v39, 2  ;;  %v451_v21 = vsel %vm444_vm3, %v448_v6, %v450_v15  ;;  %v313_v22 = vrot.slane %v2649_v44, 2 }
  0x13   :  { %2012 = vmatmul.msk.f32.gmra.mxu0 %vm103_vm1, %v80_v26  ;;  %2020 = vmatmul.msk.f32.gmra.mxu1 %vm103_vm1, %v80_v26  ;;  %v86_v43 = vsel %vm75_vm0, %v83_v31, %v85_v42  ;;  %v2070_v51 = vld [vmem:[%s3920_s1 + $0xd8] sm:$0xff]  ;;  %v88_v52 = vsel %vm75_vm0, %v85_v42, %v87_v45  ;;  %v2067_v53 = vld [vmem:[%s3920_s1 + $0xc0] sm:$0xff]  ;;  %v2068_v54 = vld [vmem:[%s3920_s1 + $0xc8] sm:$0xff]  ;;  %v90_v55 = vsel %vm75_vm0, %v87_v45, %v89_v12  ;;  %v315_v26 = vrot.slane %v2534_v9, 2 }
  0x14   :  { %2027 = vmatmul.msk.f32.vlgmr.msrb.gmra.mxu2 %vm103_vm1, %v2520_v5  ;;  %2035 = vmatmul.msk.f32.vlgmr.msrb.gmra.mxu3 %vm103_vm1, %v2520_v5  ;;  %v2097_v3 = vld [vmem:[%s3920_s1 + $0x130] sm:$0xff]  ;;  %v2098_v4 = vld [vmem:[%s3920_s1 + $0x138] sm:$0xff]  ;;  %v2095_v12 = vld [vmem:[%s3920_s1 + $0x120] sm:$0xff]  ;;  %v312_v20 = vsel %vm301_vm2, %v309_v2, %v311_v11  ;;  %v314_v24 = vsel %vm301_vm2, %v311_v11, %v313_v22  ;;  %v453_v25 = vsel %vm444_vm3, %v450_v15, %v452_v23  ;;  %v454_v28 = vrot.slane %v2630_v39, 3 }
  0x15   :  { %360 = vmatpush.msrb.mxu0 %v2045_v36  ;;  %401 = vmatpush.msrb.mxu1 %v2046_v37  ;;  %v2096_v13 = vld [vmem:[%s3920_s1 + $0x128] sm:$0xff]  ;;  %v2093_v14 = vld [vmem:[%s3920_s1 + $0x110] sm:$0xff]  ;;  %v2094_v16 = vld [vmem:[%s3920_s1 + $0x118] sm:$0xff]  ;;  %v456_v32 = vrot.slane %v2649_v44, 3  ;;  %v319_v33 = vsel %vm301_vm2, %v315_v26, %v302_v56  ;;  %v588_v35 = vrot.slane %v2520_v5, 4  ;;  %v589_v36 = vrot.slane %v2528_v7, 4 }
  0x16   :  { %501 = vmatpush.msra.mxu2 %v2073_v46  ;;  %542 = vmatpush.msra.mxu3 %v2074_v47  ;;  %v2091_v17 = vld [vmem:[%s3920_s1 + $0x100] sm:$0xff]  ;;  %v2092_v19 = vld [vmem:[%s3920_s1 + $0x108] sm:$0xff]  ;;  %v455_v31 = vsel %vm444_vm3, %v452_v23, %v454_v28  ;;  %v458_v37 = vrot.slane %v2534_v9, 3  ;;  %vm587_vm4 = vcmask 1043456   ;;  %v601_v63 = vrot.slane %v2534_v9, 4 }
  0x17   :  { %361 = vmatpush.msrb.mxu0 %v2043_v40  ;;  %402 = vmatpush.msrb.mxu1 %v2044_v41  ;;  %v457_v34 = vsel %vm444_vm3, %v454_v28, %v456_v32  ;;  %v591_v41 = vrot.slane %v2557_v18, 4  ;;  %vm772_vm5 = vcmask 523264   ;;  %vm864_vm6 = vcmask 326656  }
  0x18   :  { %502 = vmatpush.msra.mxu2 %v2071_v48  ;;  %543 = vmatpush.msra.mxu3 %v2072_v49  ;;  %v459_v40 = vsel %vm444_vm3, %v456_v32, %v458_v37  ;;  %v462_v45 = vsel %vm444_vm3, %v458_v37, %v445_v62  ;;  %vm996_vm7 = vcmask 687104   ;;  %vm971_vm8 = vcmask 1042432  }
  0x19   :  { %644 = vmatpush.msra.mxu0 %v2097_v3  ;;  %685 = vmatpush.msra.mxu1 %v2098_v4  ;;  %vm1268_vm9 = vcmask 1040384   ;;  %vm1152_vm10 = vcmask 1041408   ;;  %vm1595_vm11 = vcmask 228352   ;;  %vm1668_vm12 = vcmask 654336  }
  0x1a   :  { %503 = vmatpush.msra.mxu2 %v2069_v50  ;;  %544 = vmatpush.msra.mxu3 %v2070_v51  ;;  %v595_v50 = vrot.slane %v2599_v30, 4  ;;  %vm1920_vm13 = vcmask 982016  }
  0x1b   :  { %2013 = vmatmul.msk.f32.gmra.mxu0 %vm103_vm1, %v82_v29  ;;  %2021 = vmatmul.msk.f32.gmra.mxu1 %vm103_vm1, %v82_v29  ;;  %v316_v29 = vsel %vm301_vm2, %v313_v22, %v315_v26 }
  0x1c   :  { %2028 = vmatmul.msk.f32.gmra.mxu2 %vm103_vm1, %v2528_v7  ;;  %2036 = vmatmul.msk.f32.gmra.mxu3 %vm103_vm1, %v2528_v7 }
  0x1d   :  { %504 = vmatpush.msra.mxu2 %v2067_v53  ;;  %545 = vmatpush.msra.mxu3 %v2068_v54  ;;  %v597_v53 = vrot.slane %v2630_v39, 4 }
  0x1e   :  { %645 = vmatpush.msra.mxu0 %v2095_v12  ;;  %686 = vmatpush.msra.mxu1 %v2096_v13 }
  0x20   :  { %646 = vmatpush.msra.mxu0 %v2093_v14  ;;  %687 = vmatpush.msra.mxu1 %v2094_v16 }
  0x22   :  { %647 = vmatpush.msra.mxu0 %v2091_v17  ;;  %688 = vmatpush.msra.mxu1 %v2092_v19 }
  0x23   :  { %2014 = vmatmul.msk.f32.gmra.mxu0 %vm103_vm1, %v84_v38  ;;  %2022 = vmatmul.msk.f32.gmra.mxu1 %vm103_vm1, %v84_v38  ;;  %v590_v38 = vsel %vm587_vm4, %v588_v35, %v589_v36 }
  0x24   :  { %2029 = vmatmul.msk.f32.gmra.mxu2 %vm103_vm1, %v2557_v18  ;;  %2037 = vmatmul.msk.f32.gmra.mxu3 %vm103_vm1, %v2557_v18  ;;  %v593_v18 = vrot.slane %v2586_v27, 4 }
  0x26   :  { %v594_v48 = vsel %vm587_vm4, %v591_v41, %v593_v18 }
  0x2b   :  { %2015 = vmatmul.msk.f32.gmra.mxu0 %vm103_vm1, %v86_v43  ;;  %2023 = vmatmul.msk.f32.gmra.mxu1 %vm103_vm1, %v86_v43  ;;  %v592_v43 = vsel %vm587_vm4, %v589_v36, %v591_v41 }
  0x2c   :  { %2030 = vmatmul.msk.f32.gmra.mxu2 %vm103_vm1, %v2586_v27  ;;  %2038 = vmatmul.msk.f32.gmra.mxu3 %vm103_vm1, %v2586_v27  ;;  %v596_v27 = vsel %vm587_vm4, %v593_v18, %v595_v50 }
  0x33   :  { %2016 = vmatmul.msk.f32.gmra.mxu0 %vm103_vm1, %v88_v52  ;;  %2024 = vmatmul.msk.f32.gmra.mxu1 %vm103_vm1, %v88_v52 }
  0x34   :  { %2031 = vmatmul.msk.f32.gmra.mxu2 %vm103_vm1, %v2599_v30  ;;  %2039 = vmatmul.msk.f32.gmra.mxu3 %vm103_vm1, %v2599_v30  ;;  %v598_v30 = vsel %vm587_vm4, %v595_v50, %v597_v53 }
  0x3b   :  { %2017 = vmatmul.msk.f32.gmra.mxu0 %vm103_vm1, %v90_v55  ;;  %2025 = vmatmul.msk.f32.gmra.mxu1 %vm103_vm1, %v90_v55 }
  0x3c   :  { %2032 = vmatmul.msk.f32.gmra.mxu2 %vm103_vm1, %v2630_v39  ;;  %2040 = vmatmul.msk.f32.gmra.mxu3 %vm103_vm1, %v2630_v39 }
  0x43   :  { %2051 = vmatmul.msk.f32.vlgmr.msrb.gmra.mxu0 %vm103_vm1, %v304_v58  ;;  %2059 = vmatmul.msk.f32.vlgmr.msrb.gmra.mxu1 %vm103_vm1, %v304_v58  ;;  %v599_v58 = vrot.slane %v2649_v44, 4 }
  0x44   :  { %2033 = vmatmul.msk.f32.gmra.mxu2 %vm103_vm1, %v2649_v44  ;;  %2041 = vmatmul.msk.f32.gmra.mxu3 %vm103_vm1, %v2649_v44 }
  0x45   :  { %v600_v62 = vsel %vm587_vm4, %v597_v53, %v599_v58  ;;  %v602_v44 = vsel %vm587_vm4, %v599_v58, %v601_v63 }
  0x4b   :  { %2052 = vmatmul.msk.f32.gmra.mxu0 %vm103_vm1, %v306_v60  ;;  %2060 = vmatmul.msk.f32.gmra.mxu1 %vm103_vm1, %v306_v60 }
  0x4c   :  { %2034 = vmatmul.msk.f32.gmra.mxu2 %vm103_vm1, %v2534_v9  ;;  %2042 = vmatmul.msk.f32.gmra.mxu3 %vm103_vm1, %v2534_v9  ;;  %v605_v9 = vsel %vm587_vm4, %v601_v63, %v588_v35 }
  0x53   :  { %2053 = vmatmul.msk.f32.gmra.mxu0 %vm103_vm1, %v308_v0  ;;  %2061 = vmatmul.msk.f32.gmra.mxu1 %vm103_vm1, %v308_v0 }
  0x54   :  { %2075 = vmatmul.msk.f32.vlgmr.msra.gmra.mxu2 %vm103_vm1, %v447_v1  ;;  %2083 = vmatmul.msk.f32.vlgmr.msra.gmra.mxu3 %vm103_vm1, %v447_v1 }
  0x5b   :  { %2054 = vmatmul.msk.f32.gmra.mxu0 %vm103_vm1, %v310_v8  ;;  %2062 = vmatmul.msk.f32.gmra.mxu1 %vm103_vm1, %v310_v8 }
  0x5c   :  { %2076 = vmatmul.msk.f32.gmra.mxu2 %vm103_vm1, %v449_v10  ;;  %2084 = vmatmul.msk.f32.gmra.mxu3 %vm103_vm1, %v449_v10 }
  0x63   :  { %2055 = vmatmul.msk.f32.gmra.mxu0 %vm103_vm1, %v312_v20  ;;  %2063 = vmatmul.msk.f32.gmra.mxu1 %vm103_vm1, %v312_v20 }
  0x64   :  { %2077 = vmatmul.msk.f32.gmra.mxu2 %vm103_vm1, %v451_v21  ;;  %2085 = vmatmul.msk.f32.gmra.mxu3 %vm103_vm1, %v451_v21 }
  0x6b   :  { %2056 = vmatmul.msk.f32.gmra.mxu0 %vm103_vm1, %v314_v24  ;;  %2064 = vmatmul.msk.f32.gmra.mxu1 %vm103_vm1, %v314_v24 }
  0x6c   :  { %2078 = vmatmul.msk.f32.gmra.mxu2 %vm103_vm1, %v453_v25  ;;  %2086 = vmatmul.msk.f32.gmra.mxu3 %vm103_vm1, %v453_v25 }
  0x73   :  { %2057 = vmatmul.msk.f32.gmra.mxu0 %vm103_vm1, %v316_v29  ;;  %2065 = vmatmul.msk.f32.gmra.mxu1 %vm103_vm1, %v316_v29 }
  0x74   :  { %2079 = vmatmul.msk.f32.gmra.mxu2 %vm103_vm1, %v455_v31  ;;  %2087 = vmatmul.msk.f32.gmra.mxu3 %vm103_vm1, %v455_v31 }
  0x7b   :  { %2058 = vmatmul.msk.f32.gmra.mxu0 %vm103_vm1, %v319_v33  ;;  %2066 = vmatmul.msk.f32.gmra.mxu1 %vm103_vm1, %v319_v33 }
  0x7c   :  { %2080 = vmatmul.msk.f32.gmra.mxu2 %vm103_vm1, %v457_v34  ;;  %2088 = vmatmul.msk.f32.gmra.mxu3 %vm103_vm1, %v457_v34 }
  0x83   :  { %2099 = vmatmul.msk.f32.vlgmr.msra.gmra.mxu0 %vm103_vm1, %v590_v38  ;;  %2107 = vmatmul.msk.f32.vlgmr.msra.gmra.mxu1 %vm103_vm1, %v590_v38 }
  0x84   :  { %2081 = vmatmul.msk.f32.gmra.mxu2 %vm103_vm1, %v459_v40  ;;  %2089 = vmatmul.msk.f32.gmra.mxu3 %vm103_vm1, %v459_v40 }
  0x87   :  { %v2803_v42 = vpop.f32.mrf.mxu0 }
  0x88   :  { %v2805_v7 = vpop.f32.mrf.mxu1 }
  0x8b   :  { %2100 = vmatmul.msk.f32.gmra.mxu0 %vm103_vm1, %v592_v43  ;;  %2108 = vmatmul.msk.f32.gmra.mxu1 %vm103_vm1, %v592_v43 }
  0x8c   :  { %2082 = vmatmul.msk.f32.gmra.mxu2 %vm103_vm1, %v462_v45  ;;  %2090 = vmatmul.msk.f32.gmra.mxu3 %vm103_vm1, %v462_v45 }
  0x8d   :  { %v2821_v49 = vpop.f32.mrf.mxu3 }
  0x8e   :  { %v2823_v5 = vpop.f32.mrf.mxu2 }
  0x90   :  { %v2816_v46 = vpop.f32.mrf.mxu0  ;;  %v2818_v47 = vpop.f32.mrf.mxu1 }
  0x93   :  { %2101 = vmatmul.msk.f32.gmra.mxu0 %vm103_vm1, %v594_v48  ;;  %2109 = vmatmul.msk.f32.gmra.mxu1 %vm103_vm1, %v594_v48 }
  0x97   :  { %v2836_v54 = vpop.f32.mrf.mxu2  ;;  %v2838_v55 = vpop.f32.mrf.mxu3 }
  0x98   :  { %v2828_v51 = vpop.f32.mrf.mxu0  ;;  %v2830_v52 = vpop.f32.mrf.mxu1 }
  0x9b   :  { %2102 = vmatmul.msk.f32.gmra.mxu0 %vm103_vm1, %v596_v27  ;;  %2110 = vmatmul.msk.f32.gmra.mxu1 %vm103_vm1, %v596_v27 }
  0x9f   :  { %v2848_v59 = vpop.f32.mrf.mxu2  ;;  %v2850_v60 = vpop.f32.mrf.mxu3 }
  0xa0   :  { %v2840_v56 = vpop.f32.mrf.mxu0  ;;  %v2842_v57 = vpop.f32.mrf.mxu1 }
  0xa3   :  { %2103 = vmatmul.msk.f32.gmra.mxu0 %vm103_vm1, %v598_v30  ;;  %2111 = vmatmul.msk.f32.gmra.mxu1 %vm103_vm1, %v598_v30 }
  0xa7   :  { %v2865_v2 = vpop.f32.mrf.mxu2  ;;  %v2867_v3 = vpop.f32.mrf.mxu3 }
  0xa8   :  { %v2852_v39 = vpop.f32.mrf.mxu0  ;;  %v2854_v61 = vpop.f32.mrf.mxu1 }
  0xab   :  { %2104 = vmatmul.msk.f32.gmra.mxu0 %vm103_vm1, %v600_v62  ;;  %2112 = vmatmul.msk.f32.gmra.mxu1 %vm103_vm1, %v600_v62 }
  0xaf   :  { %v245_v8 = vpop.f32.mrf.mxu2  ;;  %v286_v10 = vpop.f32.mrf.mxu3 }
  0xb0   :  { %v2860_v0 = vpop.f32.mrf.mxu0  ;;  %v2862_v1 = vpop.f32.mrf.mxu1 }
  0xb3   :  { %2105 = vmatmul.msk.f32.gmra.mxu0 %vm103_vm1, %v602_v44  ;;  %2113 = vmatmul.msk.f32.gmra.mxu1 %vm103_vm1, %v602_v44 }
  0xb7   :  { %v248_v13 = vpop.f32.mrf.mxu2  ;;  %v289_v14 = vpop.f32.mrf.mxu3 }
  0xb8   :  { %v2871_v4 = vpop.f32.mrf.mxu0  ;;  %v2873_v6 = vpop.f32.mrf.mxu1 }
  0xbb   :  { %2106 = vmatmul.msk.f32.gmra.mxu0 %vm103_vm1, %v605_v9  ;;  %2114 = vmatmul.msk.f32.gmra.mxu1 %vm103_vm1, %v605_v9 }
  0xbf   :  { %v251_v17 = vpop.f32.mrf.mxu2  ;;  %v292_v19 = vpop.f32.mrf.mxu3 }
  0xc0   :  { %v2878_v11 = vpop.f32.mrf.mxu0  ;;  %v2880_v12 = vpop.f32.mrf.mxu1 }
  0xc7   :  { %v254_v24 = vpop.f32.mrf.mxu2  ;;  %v295_v25 = vpop.f32.mrf.mxu3 }
  0xc8   :  { %v2882_v15 = vpop.f32.mrf.mxu0  ;;  %v2884_v16 = vpop.f32.mrf.mxu1 }
  0xcf   :  { %v257_v29 = vpop.f32.mrf.mxu2  ;;  %v298_v31 = vpop.f32.mrf.mxu3 }
  0xd0   :  { %v2886_v20 = vpop.f32.mrf.mxu0  ;;  %v2888_v21 = vpop.f32.mrf.mxu1 }
  0xd1   :  { %3935 = vst [vmem:[#allocation5_spill] sm:$0xff] %v2888_v21  ;;  %v246_v21 = vadd.f32 %v245_v8, %v2840_v56  ;;  %v296_v56 = vadd.f32 %v295_v25, %v2873_v6  ;;  %v730_v6 = vld [vmem:[%s3921_s2] sm:$0x3] }
  0xd7   :  { %v2900_v34 = vpop.f32.mrf.mxu2  ;;  %v2902_v35 = vpop.f32.mrf.mxu3 }
  0xd8   :  { %v2890_v22 = vpop.f32.mrf.mxu0  ;;  %v2892_v23 = vpop.f32.mrf.mxu1  ;;  %3936 = vst [vmem:[#allocation6_spill] sm:$0xff] %v2900_v34 }
  0xd9   :  { %3937 = vst [vmem:[#allocation7_spill] sm:$0xff] %v2902_v35 }
  0xdf   :  { %v2904_v38 = vpop.f32.mrf.mxu2  ;;  %v2906_v40 = vpop.f32.mrf.mxu3 }
  0xe0   :  { %v2894_v26 = vpop.f32.mrf.mxu0  ;;  %v2896_v28 = vpop.f32.mrf.mxu1  ;;  %3938 = vst [vmem:[#allocation8_spill] sm:$0xff] %v2904_v38 }
  0xe1   :  { %3939 = vst [vmem:[#allocation9_spill] sm:$0xff] %v2906_v40 }
  0xe7   :  { %v2912_v48 = vpop.f32.mrf.mxu2  ;;  %v2914_v50 = vpop.f32.mrf.mxu3 }
  0xe8   :  { %v378_v32 = vpop.f32.mrf.mxu0  ;;  %v2898_v33 = vpop.f32.mrf.mxu1  ;;  %3942 = vst [vmem:[#allocation12_spill] sm:$0xff] %v2912_v48 }
  0xe9   :  { %3943 = vst [vmem:[#allocation13_spill] sm:$0xff] %v2914_v50 }
  0xef   :  { %v2920_v30 = vpop.f32.mrf.mxu2  ;;  %v2922_v58 = vpop.f32.mrf.mxu3 }
  0xf0   :  { %v381_v36 = vpop.f32.mrf.mxu0  ;;  %v422_v37 = vpop.f32.mrf.mxu1  ;;  %3946 = vst [vmem:[#allocation16_spill] sm:$0xff] %v2922_v58  ;;  %v243_v58 = vadd.f32 %v2865_v2, %v2828_v51 }
  0xf2   :  { %v432_v2 = vadd.f32 %v2886_v20, %v243_v58 }
  0xf7   :  { %v518_v44 = vpop.f32.mrf.mxu2  ;;  %v2928_v9 = vpop.f32.mrf.mxu3 }
  0xf8   :  { %v384_v41 = vpop.f32.mrf.mxu0  ;;  %v425_v43 = vpop.f32.mrf.mxu1  ;;  %3949 = vst [vmem:[#allocation19_spill] sm:$0xff] %v2928_v9  ;;  %v287_v9 = vadd.f32 %v286_v10, %v2842_v57 }
  0xff   :  { %v521_v35 = vpop.f32.mrf.mxu2  ;;  %v562_v34 = vpop.f32.mrf.mxu3 }
 0x100   :  { %v2908_v45 = vpop.f32.mrf.mxu0  ;;  %v2910_v18 = vpop.f32.mrf.mxu1 }
 0x101   :  { %3940 = vst [vmem:[#allocation10_spill] sm:$0xff] %v2908_v45 }
 0x102   :  { %3941 = vst [vmem:[#allocation11_spill] sm:$0xff] %v2910_v18 }
 0x107   :  { %v524_v50 = vpop.f32.mrf.mxu2  ;;  %v565_v48 = vpop.f32.mrf.mxu3 }
 0x108   :  { %v2916_v27 = vpop.f32.mrf.mxu0  ;;  %v2918_v53 = vpop.f32.mrf.mxu1 }
 0x109   :  { %3944 = vst [vmem:[#allocation14_spill] sm:$0xff] %v2916_v27 }
 0x10a   :  { %3945 = vst [vmem:[#allocation15_spill] sm:$0xff] %v2918_v53 }
 0x10f   :  { %v568_v8 = vpop.f32.mrf.mxu3 }
 0x110   :  { %v2924_v62 = vpop.f32.mrf.mxu0  ;;  %v2926_v63 = vpop.f32.mrf.mxu1 }
 0x111   :  { %3947 = vst [vmem:[#allocation17_spill] sm:$0xff] %v2924_v62  ;;  %v237_v62 = vadd.f32 %v2836_v54, %v2803_v42 }
 0x112   :  { %3948 = vst [vmem:[#allocation18_spill] sm:$0xff] %v2926_v63  ;;  %v278_v63 = vadd.f32 %v2838_v55, %v2805_v7  ;;  %v249_v7 = vadd.f32 %v248_v13, %v2852_v39  ;;  %v290_v55 = vadd.f32 %v289_v14, %v2854_v61  ;;  %v299_v39 = vadd.f32 %v298_v31, %v2823_v5 }
 0x113   :  { %v2956_v51 = vadd.f32 %v2878_v11, %v237_v62  ;;  %v3955_v62 = vld [vmem:[#allocation16_spill] sm:$0xff] }
 0x114   :  { %v436_v5 = vadd.f32 %v2894_v26, %v249_v7  ;;  %v437_v13 = vadd.f32 %v2896_v28, %v290_v55  ;;  %v435_v28 = vadd.f32 %v2892_v23, %v287_v9  ;;  %v3957_v9 = vld [vmem:[#allocation12_spill] sm:$0xff] }
 0x118   :  { %v2930_v18 = vpop.f32.mrf.mxu0  ;;  %v2932_v45 = vpop.f32.mrf.mxu1 }
 0x119   :  { %3950 = vst [vmem:[#allocation20_spill] sm:$0xff] %v2930_v18  ;;  %v240_v18 = vadd.f32 %v2848_v59, %v2816_v46  ;;  %v252_v46 = vadd.f32 %v251_v17, %v2860_v0  ;;  %v293_v59 = vadd.f32 %v292_v19, %v2862_v1  ;;  %v434_v1 = vadd.f32 %v2890_v22, %v246_v21 }
 0x11a   :  { %3951 = vst [vmem:[#allocation21_spill] sm:$0xff] %v2932_v45  ;;  %v281_v45 = vadd.f32 %v2850_v60, %v2818_v47  ;;  %v255_v47 = vadd.f32 %v254_v24, %v2871_v4  ;;  %v258_v60 = vadd.f32 %v257_v29, %v2821_v49  ;;  %v527_v4 = vpop.f32.mrf.mxu2  ;;  %v2974_v22 = vperm.slane %v730_v6, 0 }
 0x11b   :  { %v430_v57 = vadd.f32 %v2882_v15, %v240_v18  ;;  %v438_v10 = vadd.f32 %v378_v32, %v252_v46  ;;  %v439_v14 = vadd.f32 %v2898_v33, %v293_v59  ;;  %v2976_v24 = vperm.slane %v730_v6, 1 }
 0x11c   :  { %v440_v61 = vadd.f32 %v381_v36, %v255_v47  ;;  %v431_v0 = vadd.f32 %v2884_v16, %v281_v45  ;;  %v442_v11 = vadd.f32 %v384_v41, %v258_v60  ;;  %v579_v32 = vadd.f32 %v518_v44, %v436_v5  ;;  %v3968_v5 = vld [vmem:[#allocation15_spill] sm:$0xff] }
 0x11d   :  { %v581_v16 = vadd.f32 %v521_v35, %v438_v10  ;;  %v582_v21 = vadd.f32 %v562_v34, %v439_v14  ;;  %v577_v33 = vadd.f32 %v2920_v30, %v434_v1  ;;  %v3953_v35 = vld [vmem:[#allocation19_spill] sm:$0xff]  ;;  %v575_v30 = vadd.f32 %v3957_v9, %v432_v2  ;;  %v3964_v1 = vld [vmem:[#allocation18_spill] sm:$0xff] }
 0x11e   :  { %v583_v49 = vadd.f32 %v524_v50, %v440_v61  ;;  %v585_v17 = vadd.f32 %v527_v4, %v442_v11  ;;  %v580_v41 = vadd.f32 %v3953_v35, %v437_v13  ;;  %v3954_v50 = vld [vmem:[#allocation5_spill] sm:$0xff]  ;;  %v3966_v11 = vld [vmem:[#allocation14_spill] sm:$0xff] }
 0x11f   :  { %v3963_v61 = vld [vmem:[#allocation9_spill] sm:$0xff] }
 0x120   :  { %v661_v27 = vpop.f32.mrf.mxu0  ;;  %v2934_v40 = vpop.f32.mrf.mxu1  ;;  %v574_v2 = vadd.f32 %v3963_v61, %v431_v0  ;;  %v769_v9 = vld [vmem:[%s3922_s3 + $0x8] sm:$0xff]  ;;  %v843_v61 = vld [vmem:[%s3923_s4] sm:$0xff] }
 0x121   :  { %3952 = vst [vmem:[#allocation22_spill] sm:$0xff] %v2934_v40  ;;  %v284_v40 = vadd.f32 %v2867_v3, %v2830_v52  ;;  %v2959_v52 = vadd.f32 %v2880_v12, %v278_v63  ;;  %v441_v3 = vadd.f32 %v422_v37, %v296_v56  ;;  %v443_v12 = vadd.f32 %v425_v43, %v299_v39  ;;  %v3960_v55 = vld [vmem:[#allocation21_spill] sm:$0xff] }
 0x122   :  { %v722_v45 = vadd.f32 %v661_v27, %v579_v32  ;;  %v3959_v27 = vld [vmem:[#allocation13_spill] sm:$0xff]  ;;  %v717_v13 = vadd.f32 %v3968_v5, %v574_v2 }
 0x123   :  { %v584_v15 = vadd.f32 %v565_v48, %v441_v3  ;;  %v586_v19 = vadd.f32 %v568_v8, %v443_v12  ;;  %v433_v58 = vadd.f32 %v3954_v50, %v284_v40  ;;  %v3961_v40 = vld [vmem:[#allocation8_spill] sm:$0xff]  ;;  %v3962_v56 = vld [vmem:[#allocation17_spill] sm:$0xff]  ;;  %v3965_v8 = vld [vmem:[#allocation6_spill] sm:$0xff] }
 0x124   :  { %v573_v59 = vadd.f32 %v3961_v40, %v430_v57  ;;  %v718_v60 = vadd.f32 %v3962_v56, %v575_v30  ;;  %v744_v39 = vadd.f32 %v2974_v22, %v722_v45  ;;  %v571_v10 = vadd.f32 %v3965_v8, %v2956_v51  ;;  %v3967_v57 = vld [vmem:[#allocation7_spill] sm:$0xff]  ;;  %v860_v30 = vld [vmem:[%s3923_s4 + $0x88] sm:$0xff]  ;;  %v847_v40 = vld [vmem:[%s3923_s4 + $0x20] sm:$0xff] }
 0x125   :  { %v576_v7 = vadd.f32 %v3959_v27, %v433_v58  ;;  %v863_v58 = vld [vmem:[%s3923_s4 + $0xa0] sm:$0xff]  ;;  %v846_v56 = vld [vmem:[%s3923_s4 + $0x18] sm:$0xff] }
 0x126   :  { %v716_v12 = vadd.f32 %v3966_v11, %v573_v59  ;;  %v851_v27 = vld [vmem:[%s3923_s4 + $0x40] sm:$0xff]  ;;  %v771_v59 = vld [vmem:[%s3922_s3 + $0x18] sm:$0xf]  ;;  %v952_v11 = vld [vmem:[%s3924_s5 + $0x88] sm:$0xff] }
 0x127   :  { %v719_v3 = vadd.f32 %v3964_v1, %v576_v7  ;;  %v770_v7 = vld [vmem:[%s3922_s3 + $0x10] sm:$0xff]  ;;  %v859_v2 = vld [vmem:[%s3923_s4 + $0x80] sm:$0xff]  ;;  %v954_v8 = vld [vmem:[%s3924_s5 + $0x98] sm:$0xff] }
 0x128   :  { %v664_v53 = vpop.f32.mrf.mxu0  ;;  %v705_v38 = vpop.f32.mrf.mxu1  ;;  %v3956_v63 = vld [vmem:[#allocation22_spill] sm:$0xff]  ;;  %v955_v1 = vld [vmem:[%s3924_s5 + $0xa0] sm:$0xf] }
 0x129   :  { %v724_v36 = vadd.f32 %v664_v53, %v581_v16  ;;  %v725_v43 = vadd.f32 %v705_v38, %v582_v21  ;;  %v578_v53 = vadd.f32 %v3955_v62, %v435_v28  ;;  %v723_v44 = vadd.f32 %v3956_v63, %v580_v41  ;;  %v857_v62 = vld [vmem:[%s3923_s4 + $0x70] sm:$0xff]  ;;  %v856_v63 = vld [vmem:[%s3923_s4 + $0x68] sm:$0xff] }
 0x12a   :  { %v741_v21 = vadd.f32 %v2976_v24, %v719_v3  ;;  %v956_v3 = vld [vmem:[%s3924_s5 + $0xa8] sm:$0xf] }
 0x12b   :  { %v746_v38 = vadd.f32 %v2974_v22, %v724_v36  ;;  %v721_v46 = vadd.f32 %v3960_v55, %v578_v53  ;;  %v747_v47 = vadd.f32 %v2976_v24, %v725_v43  ;;  %v745_v4 = vadd.f32 %v2976_v24, %v723_v44  ;;  %v862_v53 = vld [vmem:[%s3923_s4 + $0x98] sm:$0xff]  ;;  %v861_v44 = vld [vmem:[%s3923_s4 + $0x90] sm:$0xff] }
 0x12c   :  { %v850_v55 = vld [vmem:[%s3923_s4 + $0x38] sm:$0xff] }
 0x12d   :  { %v743_v0 = vadd.f32 %v2976_v24, %v721_v46  ;;  %v849_v46 = vld [vmem:[%s3923_s4 + $0x30] sm:$0xff] }
 0x130   :  { %v667_v42 = vpop.f32.mrf.mxu0  ;;  %v708_v54 = vpop.f32.mrf.mxu1 }
 0x131   :  { %v726_v20 = vadd.f32 %v667_v42, %v583_v49  ;;  %v727_v25 = vadd.f32 %v708_v54, %v584_v15  ;;  %v3958_v42 = vld [vmem:[#allocation20_spill] sm:$0xff]  ;;  %v572_v49 = vadd.f32 %v3967_v57, %v2959_v52  ;;  %v3969_v15 = vld [vmem:[#allocation10_spill] sm:$0xff]  ;;  %v738_v52 = vadd.f32 %v2974_v22, %v716_v12 }
 0x132   :  { %v720_v54 = vadd.f32 %v3958_v42, %v577_v33  ;;  %v714_v16 = vadd.f32 %v3969_v15, %v571_v10  ;;  %v854_v42 = vld [vmem:[%s3923_s4 + $0x58] sm:$0xff]  ;;  %v951_v10 = vld [vmem:[%s3924_s5 + $0x80] sm:$0xff] }
 0x133   :  { %v748_v34 = vadd.f32 %v2974_v22, %v726_v20  ;;  %v749_v23 = vadd.f32 %v2976_v24, %v727_v25  ;;  %v950_v12 = vld [vmem:[%s3924_s5 + $0x78] sm:$0xff]  ;;  %v947_v15 = vld [vmem:[%s3924_s5 + $0x60] sm:$0xff] }
 0x134   :  { %v742_v6 = vadd.f32 %v2974_v22, %v720_v54  ;;  %v736_v36 = vadd.f32 %v2974_v22, %v714_v16  ;;  %v853_v54 = vld [vmem:[%s3923_s4 + $0x50] sm:$0xff]  ;;  %v2148_v57 = vld [vmem:[%s3924_s5 + $0x158] sm:$0xf]  ;;  %v2146_v16 = vld [vmem:[%s3924_s5 + $0x148] sm:$0xff] }
 0x135   :  { %2154 = vmatpush.msk.msrb.mxu1 %vm587_vm4, %v2148_v57  ;;  %v2185_v57 = vld [vmem:[%s3924_s5 + $0x1e0] sm:$0xff] }
 0x137   :  { %1047 = vmatpush.msrb.mxu1 %v2146_v16 }
 0x138   :  { %v670_v29 = vpop.f32.mrf.mxu0  ;;  %v711_v31 = vpop.f32.mrf.mxu1 }
 0x139   :  { %v728_v26 = vadd.f32 %v670_v29, %v585_v17  ;;  %v729_v37 = vadd.f32 %v711_v31, %v586_v19  ;;  %v740_v17 = vadd.f32 %v2974_v22, %v718_v60  ;;  %v3970_v19 = vld [vmem:[#allocation11_spill] sm:$0xff]  ;;  %v739_v31 = vadd.f32 %v2976_v24, %v717_v13  ;;  %v948_v13 = vld [vmem:[%s3924_s5 + $0x68] sm:$0xff] }
 0x13a   :  { %v715_v20 = vadd.f32 %v3970_v19, %v572_v49  ;;  %v845_v60 = vld [vmem:[%s3923_s4 + $0x10] sm:$0xff] }
 0x13b   :  { %v750_v18 = vadd.f32 %v2974_v22, %v728_v26  ;;  %v751_v48 = vadd.f32 %v2976_v24, %v729_v37  ;;  %v949_v49 = vld [vmem:[%s3924_s5 + $0x70] sm:$0xff] }
 0x13c   :  { %v737_v37 = vadd.f32 %v2976_v24, %v715_v20  ;;  %v945_v19 = vld [vmem:[%s3924_s5 + $0x50] sm:$0xff]  ;;  %v2144_v20 = vld [vmem:[%s3924_s5 + $0x138] sm:$0xff] }
 0x13d   :  { %2343 = vtanh.f32 %v750_v18  ;;  %1048 = vmatpush.msrb.mxu1 %v2144_v20 }
 0x13e   :  { %2345 = vtanh.f32 %v751_v48  ;;  %v858_v48 = vld [vmem:[%s3923_s4 + $0x78] sm:$0xff] }
 0x13f   :  { %2347 = vtanh.f32 %v748_v34  ;;  %v768_v34 = vld [vmem:[%s3922_s3] sm:$0xff] }
 0x140   :  { %2349 = vtanh.f32 %v749_v23  ;;  %v855_v23 = vld [vmem:[%s3923_s4 + $0x60] sm:$0xff] }
 0x141   :  { %2351 = vtanh.f32 %v746_v38  ;;  %v852_v38 = vld [vmem:[%s3923_s4 + $0x48] sm:$0xff] }
 0x142   :  { %2353 = vtanh.f32 %v747_v47  ;;  %v848_v47 = vld [vmem:[%s3923_s4 + $0x28] sm:$0xff] }
 0x143   :  { %v2344_v14 = vpop.eup %2343  ;;  %2355 = vtanh.f32 %v744_v39  ;;  %v844_v39 = vld [vmem:[%s3923_s4 + $0x8] sm:$0xff] }
 0x144   :  { %v2346_v51 = vpop.eup %2345  ;;  %2357 = vtanh.f32 %v745_v4  ;;  %793 = vmatpush.msrb.mxu2 %v2344_v14  ;;  %v953_v4 = vld [vmem:[%s3924_s5 + $0x90] sm:$0xff] }
 0x145   :  { %v2348_v25 = vpop.eup %2347  ;;  %2359 = vtanh.f32 %v742_v6  ;;  %822 = vmatpush.msrb.mxu3 %v2346_v51  ;;  %v2147_v6 = vld [vmem:[%s3924_s5 + $0x150] sm:$0xf] }
 0x146   :  { %v2350_v29 = vpop.eup %2349  ;;  %2361 = vtanh.f32 %v743_v0  ;;  %794 = vmatpush.msrb.mxu2 %v2348_v25  ;;  %2149 = vmatpush.msk.msrb.mxu0 %vm587_vm4, %v2147_v6  ;;  %v2145_v0 = vld [vmem:[%s3924_s5 + $0x140] sm:$0xff]  ;;  %v2143_v51 = vld [vmem:[%s3924_s5 + $0x130] sm:$0xff]  ;;  %v2208_v6 = vld [vmem:[%s3924_s5 + $0x248] sm:$0xff] }
 0x147   :  { %v2352_v32 = vpop.eup %2351  ;;  %2363 = vtanh.f32 %v740_v17  ;;  %823 = vmatpush.msrb.mxu3 %v2350_v29  ;;  %v946_v17 = vld [vmem:[%s3924_s5 + $0x58] sm:$0xff]  ;;  %v2141_v25 = vld [vmem:[%s3924_s5 + $0x120] sm:$0xff]  ;;  %v2142_v29 = vld [vmem:[%s3924_s5 + $0x128] sm:$0xff] }
 0x148   :  { %v2354_v26 = vpop.eup %2353  ;;  %2365 = vtanh.f32 %v741_v21  ;;  %795 = vmatpush.msrb.mxu2 %v2352_v32  ;;  %1018 = vmatpush.msrb.mxu0 %v2145_v0  ;;  %v944_v21 = vld [vmem:[%s3924_s5 + $0x48] sm:$0xff]  ;;  %v941_v32 = vld [vmem:[%s3924_s5 + $0x30] sm:$0xff] }
 0x149   :  { %v2356_v28 = vpop.eup %2355  ;;  %2367 = vtanh.f32 %v738_v52  ;;  %824 = vmatpush.msrb.mxu3 %v2354_v26  ;;  %v943_v52 = vld [vmem:[%s3924_s5 + $0x40] sm:$0xff]  ;;  %v940_v26 = vld [vmem:[%s3924_s5 + $0x28] sm:$0xff]  ;;  %1049 = vmatpush.msrb.mxu1 %v2142_v29  ;;  %v2183_v0 = vld [vmem:[%s3924_s5 + $0x1d0] sm:$0xff] }
 0x14a   :  { %v2358_v33 = vpop.eup %2357  ;;  %2369 = vtanh.f32 %v739_v31  ;;  %796 = vmatpush.msrb.mxu2 %v2356_v28  ;;  %1019 = vmatpush.msrb.mxu0 %v2143_v51  ;;  %v942_v31 = vld [vmem:[%s3924_s5 + $0x38] sm:$0xff]  ;;  %v939_v28 = vld [vmem:[%s3924_s5 + $0x20] sm:$0xff]  ;;  %v2179_v29 = vld [vmem:[%s3924_s5 + $0x1b0] sm:$0xff] }
 0x14b   :  { %v2360_v35 = vpop.eup %2359  ;;  %2371 = vtanh.f32 %v736_v36  ;;  %825 = vmatpush.msrb.mxu3 %v2358_v33  ;;  %v2181_v51 = vld [vmem:[%s3924_s5 + $0x1c0] sm:$0xff] }
 0x14c   :  { %v2362_v41 = vpop.eup %2361  ;;  %2373 = vtanh.f32 %v737_v37  ;;  %797 = vmatpush.msrb.mxu2 %v2360_v35  ;;  %1020 = vmatpush.msrb.mxu0 %v2141_v25  ;;  %v2202_v25 = vld [vmem:[%s3924_s5 + $0x218] sm:$0xff] }
 0x14d   :  { %v2364_v22 = vpop.eup %2363  ;;  %826 = vmatpush.msrb.mxu3 %v2362_v41 }
 0x14e   :  { %v2366_v43 = vpop.eup %2365  ;;  %798 = vmatpush.msrb.mxu2 %v2364_v22 }
 0x14f   :  { %v2368_v45 = vpop.eup %2367  ;;  %827 = vmatpush.msrb.mxu3 %v2366_v43  ;;  %v937_v43 = vld [vmem:[%s3924_s5 + $0x10] sm:$0xff] }
 0x150   :  { %v2370_v24 = vpop.eup %2369  ;;  %799 = vmatpush.msrb.mxu2 %v2368_v45  ;;  %v938_v45 = vld [vmem:[%s3924_s5 + $0x18] sm:$0xff] }
 0x151   :  { %v2372_v18 = vpop.eup %2371  ;;  %828 = vmatpush.msrb.mxu3 %v2370_v24  ;;  %v2139_v24 = vld [vmem:[%s3924_s5 + $0x110] sm:$0xff] }
 0x152   :  { %v2374_v50 = vpop.eup %2373  ;;  %800 = vmatpush.msrb.mxu2 %v2372_v18  ;;  %1021 = vmatpush.msrb.mxu0 %v2139_v24  ;;  %v935_v18 = vld [vmem:[%s3924_s5] sm:$0xff] }
 0x153   :  { %829 = vmatpush.msrb.mxu3 %v2374_v50  ;;  %2115 = vmatmul.msk.f32.vlgmr.msrb.gmra.mxu2 %vm772_vm5, %v768_v34  ;;  %v2137_v50 = vld [vmem:[%s3924_s5 + $0x100] sm:$0xff] }
 0x154   :  { %2119 = vmatmul.msk.f32.vlgmr.msrb.gmra.mxu3 %vm772_vm5, %v768_v34  ;;  %877 = vmatpush.msra.mxu2 %v858_v48  ;;  %v2140_v34 = vld [vmem:[%s3924_s5 + $0x118] sm:$0xff]  ;;  %v936_v48 = vld [vmem:[%s3924_s5 + $0x8] sm:$0xff] }
 0x155   :  { %917 = vmatpush.msra.mxu3 %v863_v58  ;;  %1050 = vmatpush.msrb.mxu1 %v2140_v34  ;;  %v2138_v58 = vld [vmem:[%s3924_s5 + $0x108] sm:$0xff] }
 0x156   :  { %878 = vmatpush.msra.mxu2 %v857_v62  ;;  %1022 = vmatpush.msrb.mxu0 %v2137_v50  ;;  %v2135_v62 = vld [vmem:[%s3924_s5 + $0xf0] sm:$0xff] }
 0x157   :  { %918 = vmatpush.msra.mxu3 %v862_v53  ;;  %1051 = vmatpush.msrb.mxu1 %v2138_v58  ;;  %v2136_v53 = vld [vmem:[%s3924_s5 + $0xf8] sm:$0xff] }
 0x158   :  { %879 = vmatpush.msra.mxu2 %v856_v63  ;;  %v2133_v63 = vld [vmem:[%s3924_s5 + $0xe0] sm:$0xff]  ;;  %1023 = vmatpush.msrb.mxu0 %v2135_v62 }
 0x159   :  { %919 = vmatpush.msra.mxu3 %v861_v44  ;;  %v2134_v44 = vld [vmem:[%s3924_s5 + $0xe8] sm:$0xff]  ;;  %1052 = vmatpush.msrb.mxu1 %v2136_v53 }
 0x15a   :  { %880 = vmatpush.msra.mxu2 %v855_v23  ;;  %1024 = vmatpush.msrb.mxu0 %v2133_v63  ;;  %v2131_v23 = vld [vmem:[%s3924_s5 + $0xd0] sm:$0xff] }
 0x15b   :  { %2116 = vmatmul.msk.f32.gmra.mxu2 %vm772_vm5, %v769_v9  ;;  %920 = vmatpush.msra.mxu3 %v860_v30  ;;  %v2129_v30 = vld [vmem:[%s3924_s5 + $0xc0] sm:$0xff] }
 0x15c   :  { %2120 = vmatmul.msk.f32.gmra.mxu3 %vm772_vm5, %v769_v9  ;;  %881 = vmatpush.msra.mxu2 %v854_v42  ;;  %v2132_v9 = vld [vmem:[%s3924_s5 + $0xd8] sm:$0xff]  ;;  %v2130_v42 = vld [vmem:[%s3924_s5 + $0xc8] sm:$0xff] }
 0x15d   :  { %921 = vmatpush.msra.mxu3 %v859_v2  ;;  %1053 = vmatpush.msrb.mxu1 %v2134_v44  ;;  %v2212_v2 = vld [vmem:[%s3924_s5 + $0x268] sm:$0xff] }
 0x15e   :  { %882 = vmatpush.msra.mxu2 %v853_v54  ;;  %1025 = vmatpush.msrb.mxu0 %v2131_v23  ;;  %v2127_v54 = vld [vmem:[%s3924_s5 + $0xb0] sm:$0xff] }
 0x15f   :  { %2164 = vmatpush.msk.msrb.mxu3 %vm587_vm4, %v956_v3  ;;  %1054 = vmatpush.msrb.mxu1 %v2132_v9  ;;  %v2190_v3 = vld [vmem:[%s3924_s5 + $0x208] sm:$0xf] }
 0x160   :  { %883 = vmatpush.msra.mxu2 %v852_v38  ;;  %1026 = vmatpush.msrb.mxu0 %v2129_v30  ;;  %v2128_v38 = vld [vmem:[%s3924_s5 + $0xb8] sm:$0xff] }
 0x161   :  { %1119 = vmatpush.msrb.mxu3 %v954_v8  ;;  %1055 = vmatpush.msrb.mxu1 %v2130_v42  ;;  %v2210_v8 = vld [vmem:[%s3924_s5 + $0x258] sm:$0xff]  ;;  %v2253_v42 = vld [vmem:[%s3924_s5 + $0x360] sm:$0xf] }
 0x162   :  { %884 = vmatpush.msra.mxu2 %v851_v27  ;;  %1027 = vmatpush.msrb.mxu0 %v2127_v54  ;;  %v2221_v27 = vld [vmem:[%s3924_s5 + $0x2b0] sm:$0xf]  ;;  %v2254_v54 = vld [vmem:[%s3924_s5 + $0x368] sm:$0xf] }
 0x163   :  { %2117 = vmatmul.msk.f32.gmra.mxu2 %vm772_vm5, %v770_v7  ;;  %1120 = vmatpush.msrb.mxu3 %v952_v11  ;;  %v2188_v11 = vld [vmem:[%s3924_s5 + $0x1f8] sm:$0xff] }
 0x164   :  { %2121 = vmatmul.msk.f32.gmra.mxu3 %vm772_vm5, %v770_v7  ;;  %885 = vmatpush.msra.mxu2 %v850_v55  ;;  %v2222_v7 = vld [vmem:[%s3924_s5 + $0x2b8] sm:$0xf]  ;;  %v2219_v55 = vld [vmem:[%s3924_s5 + $0x2a0] sm:$0xff] }
 0x165   :  { %1121 = vmatpush.msrb.mxu3 %v950_v12  ;;  %1056 = vmatpush.msrb.mxu1 %v2128_v38  ;;  %v2207_v12 = vld [vmem:[%s3924_s5 + $0x240] sm:$0xff] }
 0x166   :  { %886 = vmatpush.msra.mxu2 %v849_v46  ;;  %v2220_v46 = vld [vmem:[%s3924_s5 + $0x2a8] sm:$0xff] }
 0x167   :  { %1122 = vmatpush.msrb.mxu3 %v948_v13  ;;  %2196 = vmatpush.msk.msra.mxu1 %vm587_vm4, %v2190_v3  ;;  %v2206_v13 = vld [vmem:[%s3924_s5 + $0x238] sm:$0xff] }
 0x168   :  { %887 = vmatpush.msra.mxu2 %v848_v47  ;;  %v2217_v47 = vld [vmem:[%s3924_s5 + $0x290] sm:$0xff] }
 0x169   :  { %1123 = vmatpush.msrb.mxu3 %v946_v17  ;;  %1227 = vmatpush.msra.mxu1 %v2188_v11  ;;  %v2204_v17 = vld [vmem:[%s3924_s5 + $0x228] sm:$0xff] }
 0x16a   :  { %888 = vmatpush.msra.mxu2 %v847_v40  ;;  %v2218_v40 = vld [vmem:[%s3924_s5 + $0x298] sm:$0xff] }
 0x16b   :  { %2118 = vmatmul.msk.f32.gmra.mxu2 %vm772_vm5, %v771_v59  ;;  %1124 = vmatpush.msrb.mxu3 %v944_v21  ;;  %v2201_v21 = vld [vmem:[%s3924_s5 + $0x210] sm:$0xff] }
 0x16c   :  { %2122 = vmatmul.msk.f32.gmra.mxu3 %vm772_vm5, %v771_v59  ;;  %889 = vmatpush.msra.mxu2 %v846_v56  ;;  %v2215_v59 = vld [vmem:[%s3924_s5 + $0x280] sm:$0xff]  ;;  %v2216_v56 = vld [vmem:[%s3924_s5 + $0x288] sm:$0xff] }
 0x16d   :  { %1125 = vmatpush.msrb.mxu3 %v942_v31  ;;  %v2180_v31 = vld [vmem:[%s3924_s5 + $0x1b8] sm:$0xff] }
 0x16e   :  { %890 = vmatpush.msra.mxu2 %v845_v60  ;;  %v2213_v60 = vld [vmem:[%s3924_s5 + $0x270] sm:$0xff] }
 0x16f   :  { %1126 = vmatpush.msrb.mxu3 %v940_v26  ;;  %v2175_v26 = vld [vmem:[%s3924_s5 + $0x190] sm:$0xff] }
 0x170   :  { %891 = vmatpush.msra.mxu2 %v844_v39  ;;  %v2214_v39 = vld [vmem:[%s3924_s5 + $0x278] sm:$0xff] }
 0x171   :  { %1127 = vmatpush.msrb.mxu3 %v938_v45  ;;  %v2172_v45 = vld [vmem:[%s3924_s5 + $0x178] sm:$0xff] }
 0x172   :  { %892 = vmatpush.msra.mxu2 %v843_v61  ;;  %v2211_v61 = vld [vmem:[%s3924_s5 + $0x260] sm:$0xff] }
 0x173   :  { %1128 = vmatpush.msrb.mxu3 %v936_v48  ;;  %v2170_v48 = vld [vmem:[%s3924_s5 + $0x168] sm:$0xff] }
 0x174   :  { %2159 = vmatpush.msk.msrb.mxu2 %vm587_vm4, %v955_v1  ;;  %v2189_v1 = vld [vmem:[%s3924_s5 + $0x200] sm:$0xf] }
 0x175   :  { %2191 = vmatpush.msk.msra.mxu0 %vm587_vm4, %v2189_v1 }
 0x176   :  { %1090 = vmatpush.msrb.mxu2 %v953_v4  ;;  %v2209_v4 = vld [vmem:[%s3924_s5 + $0x250] sm:$0xff] }
 0x178   :  { %1091 = vmatpush.msrb.mxu2 %v951_v10  ;;  %v2187_v10 = vld [vmem:[%s3924_s5 + $0x1f0] sm:$0xff] }
 0x179   :  { %1198 = vmatpush.msra.mxu0 %v2187_v10 }
 0x17a   :  { %1092 = vmatpush.msrb.mxu2 %v949_v49  ;;  %v2186_v49 = vld [vmem:[%s3924_s5 + $0x1e8] sm:$0xff] }
 0x17b   :  { %1199 = vmatpush.msra.mxu0 %v2185_v57  ;;  %1228 = vmatpush.msra.mxu1 %v2186_v49 }
 0x17c   :  { %1093 = vmatpush.msrb.mxu2 %v947_v15  ;;  %v2203_v15 = vld [vmem:[%s3924_s5 + $0x220] sm:$0xff] }
 0x17d   :  { %1200 = vmatpush.msra.mxu0 %v2183_v0 }
 0x17e   :  { %1094 = vmatpush.msrb.mxu2 %v945_v19  ;;  %v2182_v19 = vld [vmem:[%s3924_s5 + $0x1c8] sm:$0xff] }
 0x17f   :  { %1201 = vmatpush.msra.mxu0 %v2181_v51  ;;  %v2237_v51 = vld [vmem:[%s3924_s5 + $0x2e0] sm:$0xff] }
 0x180   :  { %1095 = vmatpush.msrb.mxu2 %v943_v52 }
 0x181   :  { %1202 = vmatpush.msra.mxu0 %v2179_v29  ;;  %v2236_v29 = vld [vmem:[%s3924_s5 + $0x2d8] sm:$0xff] }
 0x182   :  { %1096 = vmatpush.msrb.mxu2 %v941_v32  ;;  %v2177_v32 = vld [vmem:[%s3924_s5 + $0x1a0] sm:$0xff] }
 0x183   :  { %1203 = vmatpush.msra.mxu0 %v2177_v32  ;;  %v2233_v32 = vld [vmem:[%s3924_s5 + $0x2c0] sm:$0xff] }
 0x184   :  { %1097 = vmatpush.msrb.mxu2 %v939_v28 }
 0x185   :  { %1204 = vmatpush.msra.mxu0 %v2175_v26 }
 0x186   :  { %1098 = vmatpush.msrb.mxu2 %v937_v43  ;;  %v2171_v43 = vld [vmem:[%s3924_s5 + $0x170] sm:$0xff] }
 0x188   :  { %1099 = vmatpush.msrb.mxu2 %v935_v18  ;;  %v2169_v18 = vld [vmem:[%s3924_s5 + $0x160] sm:$0xff] }
 0x1d6   :  { %v802_v5 = vpop.f32.mrf.mxu2 }
 0x1d7   :  { %v831_v14 = vpop.f32.mrf.mxu3  ;;  %893 = vmatmul.f32.vlgmr.msra.gmra.mxu2 %v802_v5  ;;  %v2205_v5 = vld [vmem:[%s3924_s5 + $0x230] sm:$0xff] }
 0x1d8   :  { %2123 = vmatmul.msk.f32.vlgmr.msra.gmra.mxu3 %vm864_vm6, %v831_v14  ;;  %2223 = vmatpush.msk.msra.mxu2 %vm587_vm4, %v2221_v27  ;;  %v2184_v14 = vld [vmem:[%s3924_s5 + $0x1d8] sm:$0xff] }
 0x1d9   :  { %2228 = vmatpush.msk.msra.mxu3 %vm587_vm4, %v2222_v7  ;;  %1229 = vmatpush.msra.mxu1 %v2184_v14  ;;  %v2239_v14 = vld [vmem:[%s3924_s5 + $0x2f0] sm:$0xff] }
 0x1da   :  { %1314 = vmatpush.msra.mxu2 %v2219_v55 }
 0x1db   :  { %1343 = vmatpush.msra.mxu3 %v2220_v46  ;;  %1230 = vmatpush.msra.mxu1 %v2182_v19  ;;  %v2251_v46 = vld [vmem:[%s3924_s5 + $0x350] sm:$0xff]  ;;  %v2238_v19 = vld [vmem:[%s3924_s5 + $0x2e8] sm:$0xff] }
 0x1dc   :  { %1315 = vmatpush.msra.mxu2 %v2217_v47  ;;  %v2252_v47 = vld [vmem:[%s3924_s5 + $0x358] sm:$0xff] }
 0x1dd   :  { %1344 = vmatpush.msra.mxu3 %v2218_v40  ;;  %1231 = vmatpush.msra.mxu1 %v2180_v31  ;;  %v2249_v40 = vld [vmem:[%s3924_s5 + $0x340] sm:$0xff] }
 0x1de   :  { %v805_v36 = vpop.f32.mrf.mxu2  ;;  %1316 = vmatpush.msra.mxu2 %v2215_v59  ;;  %v2250_v59 = vld [vmem:[%s3924_s5 + $0x348] sm:$0xff] }
 0x1df   :  { %v834_v37 = vpop.f32.mrf.mxu3  ;;  %896 = vmatmul.f32.gmra.mxu2 %v805_v36  ;;  %1345 = vmatpush.msra.mxu3 %v2216_v56  ;;  %v2178_v36 = vld [vmem:[%s3924_s5 + $0x1a8] sm:$0xff] }
 0x1e0   :  { %2124 = vmatmul.msk.f32.gmra.mxu3 %vm864_vm6, %v834_v37  ;;  %1317 = vmatpush.msra.mxu2 %v2213_v60  ;;  %v2176_v37 = vld [vmem:[%s3924_s5 + $0x198] sm:$0xff] }
 0x1e1   :  { %1346 = vmatpush.msra.mxu3 %v2214_v39  ;;  %1232 = vmatpush.msra.mxu1 %v2178_v36  ;;  %v2234_v36 = vld [vmem:[%s3924_s5 + $0x2c8] sm:$0xff] }
 0x1e2   :  { %1318 = vmatpush.msra.mxu2 %v2211_v61  ;;  %v2247_v61 = vld [vmem:[%s3924_s5 + $0x330] sm:$0xff] }
 0x1e3   :  { %1347 = vmatpush.msra.mxu3 %v2212_v2  ;;  %1233 = vmatpush.msra.mxu1 %v2176_v37  ;;  %v2248_v2 = vld [vmem:[%s3924_s5 + $0x338] sm:$0xff] }
 0x1e4   :  { %1319 = vmatpush.msra.mxu2 %v2209_v4  ;;  %v2245_v4 = vld [vmem:[%s3924_s5 + $0x320] sm:$0xff] }
 0x1e5   :  { %1348 = vmatpush.msra.mxu3 %v2210_v8  ;;  %v2246_v8 = vld [vmem:[%s3924_s5 + $0x328] sm:$0xff] }
 0x1e6   :  { %v808_v33 = vpop.f32.mrf.mxu2  ;;  %1320 = vmatpush.msra.mxu2 %v2207_v12  ;;  %v2243_v12 = vld [vmem:[%s3924_s5 + $0x310] sm:$0xff] }
 0x1e7   :  { %v837_v35 = vpop.f32.mrf.mxu3  ;;  %899 = vmatmul.f32.gmra.mxu2 %v808_v33  ;;  %1349 = vmatpush.msra.mxu3 %v2208_v6  ;;  %v2173_v33 = vld [vmem:[%s3924_s5 + $0x180] sm:$0xff]  ;;  %v2244_v6 = vld [vmem:[%s3924_s5 + $0x318] sm:$0xff] }
 0x1e8   :  { %2125 = vmatmul.msk.f32.gmra.mxu3 %vm864_vm6, %v837_v35  ;;  %1321 = vmatpush.msra.mxu2 %v2205_v5  ;;  %v2174_v35 = vld [vmem:[%s3924_s5 + $0x188] sm:$0xff]  ;;  %v2241_v5 = vld [vmem:[%s3924_s5 + $0x300] sm:$0xff] }
 0x1e9   :  { %1350 = vmatpush.msra.mxu3 %v2206_v13  ;;  %1205 = vmatpush.msra.mxu0 %v2173_v33  ;;  %v2242_v13 = vld [vmem:[%s3924_s5 + $0x308] sm:$0xff] }
 0x1ea   :  { %1322 = vmatpush.msra.mxu2 %v2203_v15  ;;  %1234 = vmatpush.msra.mxu1 %v2174_v35  ;;  %v2240_v15 = vld [vmem:[%s3924_s5 + $0x2f8] sm:$0xff] }
 0x1eb   :  { %1351 = vmatpush.msra.mxu3 %v2204_v17  ;;  %1206 = vmatpush.msra.mxu0 %v2171_v43 }
 0x1ec   :  { %1323 = vmatpush.msra.mxu2 %v2201_v21  ;;  %1235 = vmatpush.msra.mxu1 %v2172_v45 }
 0x1ed   :  { %1352 = vmatpush.msra.mxu3 %v2202_v25  ;;  %1207 = vmatpush.msra.mxu0 %v2169_v18  ;;  %v2235_v25 = vld [vmem:[%s3924_s5 + $0x2d0] sm:$0xff] }
 0x1ee   :  { %v811_v41 = vpop.f32.mrf.mxu2  ;;  %1236 = vmatpush.msra.mxu1 %v2170_v48 }
 0x1ef   :  { %v840_v22 = vpop.f32.mrf.mxu3  ;;  %902 = vmatmul.f32.gmra.mxu2 %v811_v41 }
 0x1f0   :  { %2126 = vmatmul.msk.f32.gmra.mxu3 %vm864_vm6, %v840_v22 }
 0x25a   :  { %v894_v16 = vpop.f32.mrf.mxu2 }
 0x25b   :  { %v923_v20 = vpop.f32.mrf.mxu3 }
 0x25c   :  { %v3339_v52 = vadd.f32 %v923_v20, %v894_v16 }
 0x25e   :  { %2160 = vmatmul.msk.f32.vlgmr.msrb.gmra.mxu2 %vm996_vm7, %v3339_v52  ;;  %2165 = vmatmul.msk.f32.vlgmr.msrb.gmra.mxu3 %vm996_vm7, %v3339_v52  ;;  %v961_v24 = vrot.slane %v3339_v52, 1  ;;  %v1258_v3 = vrot.slane %v3339_v52, 3  ;;  %v969_v11 = vrot.slane %v3339_v52, 5  ;;  %v1142_v17 = vrot.slane %v3339_v52, 2 }
 0x25f   :  { %v1150_v43 = vrot.slane %v3339_v52, 6 }
 0x262   :  { %v897_v28 = vpop.f32.mrf.mxu2 }
 0x263   :  { %v926_v41 = vpop.f32.mrf.mxu3 }
 0x264   :  { %v3369_v22 = vadd.f32 %v926_v41, %v897_v28  ;;  %v1266_v28 = vrot.slane %v3339_v52, 7 }
 0x266   :  { %2161 = vmatmul.msk.f32.gmra.mxu2 %vm996_vm7, %v3369_v22  ;;  %2166 = vmatmul.msk.f32.gmra.mxu3 %vm996_vm7, %v3369_v22  ;;  %v962_v34 = vrot.slane %v3369_v22, 1  ;;  %v1375_v44 = vrot.slane %v3369_v22, 4  ;;  %v1259_v39 = vrot.slane %v3369_v22, 3  ;;  %v1143_v0 = vrot.slane %v3369_v22, 2 }
 0x268   :  { %v963_v50 = vsel %vm75_vm0, %v961_v24, %v962_v34  ;;  %v1260_v10 = vsel %vm444_vm3, %v1258_v3, %v1259_v39  ;;  %v1144_v20 = vsel %vm301_vm2, %v1142_v17, %v1143_v0  ;;  %v1374_v24 = vrot.slane %v3339_v52, 4  ;;  %v1523_v3 = vld [vmem:[%s3926_s7 + $0x98] sm:$0xff] }
 0x269   :  { %2150 = vmatmul.msk.f32.vlgmr.msrb.gmra.mxu0 %vm996_vm7, %v963_v50  ;;  %2155 = vmatmul.msk.f32.vlgmr.msrb.gmra.mxu1 %vm996_vm7, %v963_v50 }
 0x26a   :  { %v900_v58 = vpop.f32.mrf.mxu2  ;;  %2255 = vmatpush.msk.msrb.mxu0 %vm587_vm4, %v2253_v42  ;;  %2260 = vmatpush.msk.msrb.mxu1 %vm587_vm4, %v2254_v54  ;;  %v1514_v42 = vld [vmem:[%s3926_s7 + $0x50] sm:$0xff] }
 0x26b   :  { %v929_v62 = vpop.f32.mrf.mxu3  ;;  %1577 = vmatpush.msrb.mxu3 %v1523_v3 }
 0x26c   :  { %v3392_v53 = vadd.f32 %v929_v62, %v900_v58  ;;  %1422 = vmatpush.msrb.mxu0 %v2251_v46  ;;  %1451 = vmatpush.msrb.mxu1 %v2252_v47  ;;  %v1519_v58 = vld [vmem:[%s3926_s7 + $0x78] sm:$0xff]  ;;  %v1518_v62 = vld [vmem:[%s3926_s7 + $0x70] sm:$0xff]  ;;  %v1512_v46 = vld [vmem:[%s3926_s7 + $0x40] sm:$0xff] }
 0x26d   :  { %1536 = vmatpush.msrb.mxu2 %v1519_v58  ;;  %v1511_v47 = vld [vmem:[%s3926_s7 + $0x38] sm:$0xff] }
 0x26e   :  { %2162 = vmatmul.msk.f32.gmra.mxu2 %vm996_vm7, %v3392_v53  ;;  %2167 = vmatmul.msk.f32.gmra.mxu3 %vm996_vm7, %v3392_v53  ;;  %v964_v63 = vrot.slane %v3392_v53, 1  ;;  %v1377_v23 = vrot.slane %v3392_v53, 4  ;;  %v1261_v49 = vrot.slane %v3392_v53, 3  ;;  %v1145_v31 = vrot.slane %v3392_v53, 2 }
 0x26f   :  { %1423 = vmatpush.msrb.mxu0 %v2249_v40  ;;  %1452 = vmatpush.msrb.mxu1 %v2250_v59  ;;  %v1510_v40 = vld [vmem:[%s3926_s7 + $0x30] sm:$0xff] }
 0x270   :  { %v965_v9 = vsel %vm75_vm0, %v962_v34, %v964_v63  ;;  %v3405_v30 = vsel %vm587_vm4, %v1375_v44, %v1377_v23  ;;  %v1262_v16 = vsel %vm444_vm3, %v1259_v39, %v1261_v49  ;;  %v1146_v37 = vsel %vm301_vm2, %v1143_v0, %v1145_v31  ;;  %1537 = vmatpush.msrb.mxu2 %v1518_v62 }
 0x271   :  { %2151 = vmatmul.msk.f32.gmra.mxu0 %vm996_vm7, %v965_v9  ;;  %2156 = vmatmul.msk.f32.gmra.mxu1 %vm996_vm7, %v965_v9  ;;  %v1376_v34 = vsel %vm587_vm4, %v1374_v24, %v1375_v44  ;;  %v1516_v9 = vld [vmem:[%s3926_s7 + $0x60] sm:$0xff] }
 0x272   :  { %v903_v38 = vpop.f32.mrf.mxu2  ;;  %1424 = vmatpush.msrb.mxu0 %v2247_v61  ;;  %1453 = vmatpush.msrb.mxu1 %v2248_v2  ;;  %v1508_v2 = vld [vmem:[%s3926_s7 + $0x20] sm:$0xff] }
 0x273   :  { %v932_v27 = vpop.f32.mrf.mxu3 }
 0x274   :  { %v3417_v7 = vadd.f32 %v932_v27, %v903_v38  ;;  %1425 = vmatpush.msrb.mxu0 %v2245_v4  ;;  %1454 = vmatpush.msrb.mxu1 %v2246_v8  ;;  %v1506_v4 = vld [vmem:[%s3926_s7 + $0x10] sm:$0xff] }
 0x275   :  { %v1522_v8 = vld [vmem:[%s3926_s7 + $0x90] sm:$0xff] }
 0x276   :  { %2163 = vmatmul.msk.f32.gmra.mxu2 %vm996_vm7, %v3417_v7  ;;  %2168 = vmatmul.msk.f32.gmra.mxu3 %vm996_vm7, %v3417_v7  ;;  %v966_v55 = vrot.slane %v3417_v7, 1  ;;  %v1379_v56 = vrot.slane %v3417_v7, 4  ;;  %v1263_v21 = vrot.slane %v3417_v7, 3  ;;  %v1147_v33 = vrot.slane %v3417_v7, 2 }
 0x277   :  { %1426 = vmatpush.msrb.mxu0 %v2243_v12  ;;  %1455 = vmatpush.msrb.mxu1 %v2244_v6  ;;  %v1505_v12 = vld [vmem:[%s3926_s7 + $0x8] sm:$0xff] }
 0x278   :  { %v967_v60 = vsel %vm75_vm0, %v964_v63, %v966_v55  ;;  %v3448_v1 = vsel %vm587_vm4, %v1377_v23, %v1379_v56  ;;  %v972_v57 = vsel %vm971_vm8, %v966_v55, %v969_v11  ;;  %v1264_v26 = vsel %vm444_vm3, %v1261_v49, %v1263_v21  ;;  %v1517_v23 = vld [vmem:[%s3926_s7 + $0x68] sm:$0xff]  ;;  %1578 = vmatpush.msrb.mxu3 %v1522_v8  ;;  %v1520_v49 = vld [vmem:[%s3926_s7 + $0x80] sm:$0xff] }
 0x279   :  { %2152 = vmatmul.msk.f32.gmra.mxu0 %vm996_vm7, %v967_v60  ;;  %2157 = vmatmul.msk.f32.gmra.mxu1 %vm996_vm7, %v967_v60  ;;  %v1269_v35 = vsel %vm1268_vm9, %v1263_v21, %v1266_v28  ;;  %v1148_v41 = vsel %vm301_vm2, %v1145_v31, %v1147_v33  ;;  %v1153_v45 = vsel %vm1152_vm10, %v1147_v33, %v1150_v43  ;;  %v1513_v55 = vld [vmem:[%s3926_s7 + $0x48] sm:$0xff] }
 0x27a   :  { %1427 = vmatpush.msrb.mxu0 %v2241_v5  ;;  %1456 = vmatpush.msrb.mxu1 %v2242_v13  ;;  %v1509_v60 = vld [vmem:[%s3926_s7 + $0x28] sm:$0xff] }
 0x27b   :  { %1538 = vmatpush.msrb.mxu2 %v1517_v23  ;;  %v1521_v6 = vld [vmem:[%s3926_s7 + $0x88] sm:$0xff] }
 0x27c   :  { %1428 = vmatpush.msrb.mxu0 %v2239_v14  ;;  %1457 = vmatpush.msrb.mxu1 %v2240_v15 }
 0x27d   :  { %1539 = vmatpush.msrb.mxu2 %v1516_v9  ;;  %1579 = vmatpush.msrb.mxu3 %v1521_v6 }
 0x27e   :  { %2224 = vmatmul.msk.f32.vlgmr.msra.gmra.mxu2 %vm996_vm7, %v1260_v10  ;;  %2229 = vmatmul.msk.f32.vlgmr.msra.gmra.mxu3 %vm996_vm7, %v1260_v10 }
 0x27f   :  { %1429 = vmatpush.msrb.mxu0 %v2237_v51  ;;  %1458 = vmatpush.msrb.mxu1 %v2238_v19 }
 0x280   :  { %1580 = vmatpush.msrb.mxu3 %v1520_v49 }
 0x281   :  { %2153 = vmatmul.msk.f32.gmra.mxu0 %vm996_vm7, %v972_v57  ;;  %2158 = vmatmul.msk.f32.gmra.mxu1 %vm996_vm7, %v972_v57  ;;  %v1504_v57 = vld [vmem:[%s3926_s7] sm:$0xff] }
 0x282   :  { %1430 = vmatpush.msrb.mxu0 %v2235_v25  ;;  %1459 = vmatpush.msrb.mxu1 %v2236_v29  ;;  %v1482_v29 = vld [vmem:[%s3925_s6] sm:$0x3] }
 0x284   :  { %1431 = vmatpush.msrb.mxu0 %v2233_v32  ;;  %1460 = vmatpush.msrb.mxu1 %v2234_v36  ;;  %v3625_v32 = vperm.slane %v1482_v29, 0 }
 0x286   :  { %2225 = vmatmul.msk.f32.gmra.mxu2 %vm996_vm7, %v1262_v16  ;;  %2230 = vmatmul.msk.f32.gmra.mxu3 %vm996_vm7, %v1262_v16 }
 0x289   :  { %2192 = vmatmul.msk.f32.vlgmr.msra.gmra.mxu0 %vm996_vm7, %v1144_v20  ;;  %2197 = vmatmul.msk.f32.vlgmr.msra.gmra.mxu1 %vm996_vm7, %v1144_v20 }
 0x28e   :  { %2226 = vmatmul.msk.f32.gmra.mxu2 %vm996_vm7, %v1264_v26  ;;  %2231 = vmatmul.msk.f32.gmra.mxu3 %vm996_vm7, %v1264_v26  ;;  %v3627_v26 = vperm.slane %v1482_v29, 1  ;;  %v1630_v29 = vld [vmem:[%s3928_s9 + $0x40] sm:$0xff] }
 0x291   :  { %2193 = vmatmul.msk.f32.gmra.mxu0 %vm996_vm7, %v1146_v37  ;;  %2198 = vmatmul.msk.f32.gmra.mxu1 %vm996_vm7, %v1146_v37 }
 0x296   :  { %2227 = vmatmul.msk.f32.gmra.mxu2 %vm996_vm7, %v1269_v35  ;;  %2232 = vmatmul.msk.f32.gmra.mxu3 %vm996_vm7, %v1269_v35 }
 0x299   :  { %2194 = vmatmul.msk.f32.gmra.mxu0 %vm996_vm7, %v1148_v41  ;;  %2199 = vmatmul.msk.f32.gmra.mxu1 %vm996_vm7, %v1148_v41 }
 0x2a1   :  { %2195 = vmatmul.msk.f32.gmra.mxu0 %vm996_vm7, %v1153_v45  ;;  %2200 = vmatmul.msk.f32.gmra.mxu1 %vm996_vm7, %v1153_v45 }
 0x2a9   :  { %2256 = vmatmul.msk.f32.vlgmr.msrb.gmra.mxu0 %vm996_vm7, %v1376_v34  ;;  %2261 = vmatmul.msk.f32.vlgmr.msrb.gmra.mxu1 %vm996_vm7, %v1376_v34 }
 0x2b1   :  { %2257 = vmatmul.msk.f32.gmra.mxu0 %vm996_vm7, %v3405_v30  ;;  %2262 = vmatmul.msk.f32.gmra.mxu1 %vm996_vm7, %v3405_v30  ;;  %v1515_v30 = vld [vmem:[%s3926_s7 + $0x58] sm:$0xff] }
 0x2b2   :  { %1540 = vmatpush.msrb.mxu2 %v1515_v30 }
 0x2b4   :  { %1541 = vmatpush.msrb.mxu2 %v1514_v42 }
 0x2b6   :  { %1542 = vmatpush.msrb.mxu2 %v1513_v55 }
 0x2b8   :  { %1543 = vmatpush.msrb.mxu2 %v1512_v46 }
 0x2b9   :  { %2258 = vmatmul.msk.f32.gmra.mxu0 %vm996_vm7, %v3448_v1  ;;  %2263 = vmatmul.msk.f32.gmra.mxu1 %vm996_vm7, %v3448_v1  ;;  %v1507_v1 = vld [vmem:[%s3926_s7 + $0x18] sm:$0xff]  ;;  %s1994_s7 = sshll.u32 %s3934_s15, 4  ;;  %s1995_s7 = int_to_ptr.hbm [resolvable:$true] %s1994_s7 }
 0x2ba   :  { %1544 = vmatpush.msrb.mxu2 %v1511_v47 }
 0x2bc   :  { %1545 = vmatpush.msrb.mxu2 %v1510_v40 }
 0x2be   :  { %1546 = vmatpush.msrb.mxu2 %v1509_v60 }
 0x2c0   :  { %1547 = vmatpush.msrb.mxu2 %v1508_v2 }
 0x2c1   :  { %2259 = vmatmul.msk.f32.gmra.mxu0 %vm996_vm7, %v3339_v52  ;;  %2264 = vmatmul.msk.f32.gmra.mxu1 %vm996_vm7, %v3339_v52 }
 0x2c2   :  { %1548 = vmatpush.msrb.mxu2 %v1507_v1 }
 0x2c4   :  { %1549 = vmatpush.msrb.mxu2 %v1506_v4 }
 0x2c6   :  { %1550 = vmatpush.msrb.mxu2 %v1505_v12 }
 0x2c8   :  { %1551 = vmatpush.msrb.mxu2 %v1504_v57 }
 0x2e1   :  { %v1101_v53 = vpop.f32.mrf.mxu2  ;;  %v1130_v52 = vpop.f32.mrf.mxu3 }
 0x2e6   :  { %v3544_v22 = vpop.f32.mrf.mxu0  ;;  %v3546_v18 = vpop.f32.mrf.mxu1 }
 0x2e7   :  { %v1102_v19 = vadd.f32 %v1101_v53, %v3544_v22  ;;  %v1131_v20 = vadd.f32 %v1130_v52, %v3546_v18 }
 0x2e9   :  { %v1104_v27 = vpop.f32.mrf.mxu2  ;;  %v1133_v7 = vpop.f32.mrf.mxu3 }
 0x2ee   :  { %v3548_v48 = vpop.f32.mrf.mxu0  ;;  %v3550_v50 = vpop.f32.mrf.mxu1 }
 0x2ef   :  { %v1105_v33 = vadd.f32 %v1104_v27, %v3548_v48  ;;  %v1134_v35 = vadd.f32 %v1133_v7, %v3550_v50 }
 0x2f1   :  { %v1107_v39 = vpop.f32.mrf.mxu2  ;;  %v1136_v61 = vpop.f32.mrf.mxu3 }
 0x2f6   :  { %v3558_v63 = vpop.f32.mrf.mxu0  ;;  %v3560_v44 = vpop.f32.mrf.mxu1 }
 0x2f7   :  { %v1108_v48 = vadd.f32 %v1107_v39, %v3558_v63  ;;  %v1137_v50 = vadd.f32 %v1136_v61, %v3560_v44 }
 0x2f9   :  { %v1110_v5 = vpop.f32.mrf.mxu2  ;;  %v1139_v13 = vpop.f32.mrf.mxu3 }
 0x2fe   :  { %v3574_v54 = vpop.f32.mrf.mxu0  ;;  %v3576_v38 = vpop.f32.mrf.mxu1 }
 0x2ff   :  { %v1111_v39 = vadd.f32 %v1110_v5, %v3574_v54  ;;  %v1140_v61 = vadd.f32 %v1139_v13, %v3576_v38 }
 0x301   :  { %v1325_v15 = vpop.f32.mrf.mxu2  ;;  %v1354_v16 = vpop.f32.mrf.mxu3 }
 0x306   :  { %v1209_v59 = vpop.f32.mrf.mxu0  ;;  %v1238_v56 = vpop.f32.mrf.mxu1 }
 0x307   :  { %v1250_v21 = vadd.f32 %v1209_v59, %v1102_v19  ;;  %v1251_v25 = vadd.f32 %v1238_v56, %v1131_v20  ;;  %v2283_v20 = vld [vmem:[%s3928_s9 + $0x98] sm:$0xff] }
 0x308   :  { %1678 = vmatpush.msra.mxu2 %v2283_v20  ;;  %v2319_v20 = vld [vmem:[%s3928_s9 + $0x150] sm:$0xff] }
 0x309   :  { %v1366_v31 = vadd.f32 %v1325_v15, %v1250_v21  ;;  %v1367_v36 = vadd.f32 %v1354_v16, %v1251_v25  ;;  %v1328_v45 = vpop.f32.mrf.mxu2  ;;  %v1357_v24 = vpop.f32.mrf.mxu3  ;;  %v1631_v21 = vld [vmem:[%s3928_s9 + $0x48] sm:$0xff]  ;;  %v2282_v25 = vld [vmem:[%s3928_s9 + $0x90] sm:$0xff] }
 0x30a   :  { %1701 = vmatpush.msra.mxu3 %v1631_v21  ;;  %1679 = vmatpush.msra.mxu2 %v2282_v25  ;;  %v2289_v21 = vld [vmem:[%s3928_s9 + $0xa0] sm:$0xff]  ;;  %v2303_v25 = vld [vmem:[%s3928_s9 + $0xf0] sm:$0xff] }
 0x30c   :  { %1702 = vmatpush.msra.mxu3 %v1630_v29  ;;  %v2318_v29 = vld [vmem:[%s3928_s9 + $0x148] sm:$0xff] }
 0x30e   :  { %v1212_v10 = vpop.f32.mrf.mxu0  ;;  %v1241_v11 = vpop.f32.mrf.mxu1 }
 0x30f   :  { %v1252_v34 = vadd.f32 %v1212_v10, %v1105_v33  ;;  %v1253_v22 = vadd.f32 %v1241_v11, %v1134_v35  ;;  %v2278_v33 = vld [vmem:[%s3928_s9 + $0x70] sm:$0xff]  ;;  %v1626_v35 = vld [vmem:[%s3928_s9 + $0x20] sm:$0xff] }
 0x311   :  { %v1368_v62 = vadd.f32 %v1328_v45, %v1252_v34  ;;  %v1369_v53 = vadd.f32 %v1357_v24, %v1253_v22  ;;  %v1331_v40 = vpop.f32.mrf.mxu2  ;;  %v1360_v59 = vpop.f32.mrf.mxu3  ;;  %v2276_v45 = vld [vmem:[%s3928_s9 + $0x60] sm:$0xff]  ;;  %v1624_v24 = vld [vmem:[%s3928_s9 + $0x10] sm:$0xff]  ;;  %v2275_v34 = vld [vmem:[%s3928_s9 + $0x58] sm:$0xff] }
 0x312   :  { %v1623_v22 = vld [vmem:[%s3928_s9 + $0x8] sm:$0xff] }
 0x316   :  { %v1215_v0 = vpop.f32.mrf.mxu0  ;;  %v1244_v14 = vpop.f32.mrf.mxu1 }
 0x317   :  { %v1254_v27 = vadd.f32 %v1215_v0, %v1108_v48  ;;  %v1255_v7 = vadd.f32 %v1244_v14, %v1137_v50 }
 0x319   :  { %v1370_v63 = vadd.f32 %v1331_v40, %v1254_v27  ;;  %v1371_v56 = vadd.f32 %v1360_v59, %v1255_v7  ;;  %v1334_v6 = vpop.f32.mrf.mxu2  ;;  %v1363_v57 = vpop.f32.mrf.mxu3  ;;  %v2314_v40 = vld [vmem:[%s3927_s8 + $0x8] sm:$0x3] }
 0x31a   :  { %v2298_v59 = vld [vmem:[%s3928_s9 + $0xe8] sm:$0xff] }
 0x31e   :  { %v1218_v17 = vpop.f32.mrf.mxu0  ;;  %v1247_v51 = vpop.f32.mrf.mxu1 }
 0x31f   :  { %v1256_v4 = vadd.f32 %v1218_v17, %v1111_v39  ;;  %v1257_v8 = vadd.f32 %v1247_v51, %v1140_v61  ;;  %v2312_v39 = vld [vmem:[%s3928_s9 + $0x138] sm:$0xff]  ;;  %v2326_v61 = vld [vmem:[%s3928_s9 + $0x188] sm:$0xff] }
 0x321   :  { %v1372_v54 = vadd.f32 %v1334_v6, %v1256_v4  ;;  %v1373_v49 = vadd.f32 %v1363_v57, %v1257_v8  ;;  %v2325_v4 = vld [vmem:[%s3928_s9 + $0x180] sm:$0xff]  ;;  %v2310_v8 = vld [vmem:[%s3928_s9 + $0x128] sm:$0xff] }
 0x322   :  { %v2286_v6 = vld [vmem:[%s3927_s8 + $0x4] sm:$0x3]  ;;  %v2300_v57 = vld [vmem:[%s3927_s8 + $0x6] sm:$0x3] }
 0x326   :  { %v1433_v37 = vpop.f32.mrf.mxu0  ;;  %v1462_v28 = vpop.f32.mrf.mxu1 }
 0x327   :  { %v1474_v41 = vadd.f32 %v1433_v37, %v1366_v31  ;;  %v1475_v43 = vadd.f32 %v1462_v28, %v1367_v36  ;;  %v2281_v31 = vld [vmem:[%s3928_s9 + $0x88] sm:$0xff]  ;;  %v2280_v36 = vld [vmem:[%s3928_s9 + $0x80] sm:$0xff]  ;;  %v2279_v37 = vld [vmem:[%s3928_s9 + $0x78] sm:$0xff] }
 0x328   :  { %1680 = vmatpush.msra.mxu2 %v2281_v31  ;;  %v1627_v28 = vld [vmem:[%s3928_s9 + $0x28] sm:$0xff]  ;;  %v2317_v31 = vld [vmem:[%s3928_s9 + $0x140] sm:$0xff] }
 0x329   :  { %v1488_v18 = vadd.f32 %v3625_v32, %v1474_v41  ;;  %v1489_v58 = vadd.f32 %v3627_v26, %v1475_v43  ;;  %v2277_v41 = vld [vmem:[%s3928_s9 + $0x68] sm:$0xff]  ;;  %v1625_v43 = vld [vmem:[%s3928_s9 + $0x18] sm:$0xff] }
 0x32a   :  { %1681 = vmatpush.msra.mxu2 %v2280_v36  ;;  %v1914_v36 = vld [vmem:[%s3930_s11 + $0x68] sm:$0xff] }
 0x32b   :  { %2375 = vtanh.f32 %v1488_v18  ;;  %v2274_v18 = vld [vmem:[%s3928_s9 + $0x50] sm:$0xff] }
 0x32c   :  { %2377 = vtanh.f32 %v1489_v58  ;;  %1682 = vmatpush.msra.mxu2 %v2279_v37  ;;  %v1622_v58 = vld [vmem:[%s3928_s9] sm:$0xff] }
 0x32d   :  { %v1913_v37 = vld [vmem:[%s3930_s11 + $0x60] sm:$0xff] }
 0x32e   :  { %v1436_v52 = vpop.f32.mrf.mxu0  ;;  %v1465_v23 = vpop.f32.mrf.mxu1  ;;  %1683 = vmatpush.msra.mxu2 %v2278_v33  ;;  %v1911_v33 = vld [vmem:[%s3930_s11 + $0x50] sm:$0xff] }
 0x32f   :  { %v1476_v9 = vadd.f32 %v1436_v52, %v1368_v62  ;;  %v1477_v30 = vadd.f32 %v1465_v23, %v1369_v53 }
 0x330   :  { %1684 = vmatpush.msra.mxu2 %v2277_v41 }
 0x331   :  { %v2376_v42 = vpop.eup %2375  ;;  %v1490_v55 = vadd.f32 %v3625_v32, %v1476_v9  ;;  %v1491_v46 = vadd.f32 %v3627_v26, %v1477_v30 }
 0x332   :  { %v2378_v47 = vpop.eup %2377  ;;  %1552 = vmatmul.f32.vlgmr.msrb.gmra.mxu2 %v2376_v42 }
 0x333   :  { %2379 = vtanh.f32 %v1490_v55  ;;  %2265 = vmatmul.msk.f32.vlgmr.msrb.gmra.mxu3 %vm103_vm1, %v2378_v47  ;;  %1685 = vmatpush.msra.mxu2 %v2276_v45  ;;  %v2271_v47 = vld [vmem:[%s3927_s8 + $0x2] sm:$0x3] }
 0x334   :  { %2381 = vtanh.f32 %v1491_v46  ;;  %v1594_v46 = vld [vmem:[%s3927_s8] sm:$0x3] }
 0x335   :  { %1686 = vmatpush.msra.mxu2 %v2275_v34  ;;  %v1910_v34 = vld [vmem:[%s3930_s11 + $0x48] sm:$0xff] }
 0x336   :  { %v1439_v44 = vpop.f32.mrf.mxu0  ;;  %v1468_v60 = vpop.f32.mrf.mxu1 }
 0x337   :  { %v1478_v2 = vadd.f32 %v1439_v44, %v1370_v63  ;;  %v1479_v1 = vadd.f32 %v1468_v60, %v1371_v56  ;;  %1687 = vmatpush.msra.mxu2 %v2274_v18  ;;  %v2297_v63 = vld [vmem:[%s3928_s9 + $0xe0] sm:$0xff]  ;;  %v2296_v56 = vld [vmem:[%s3928_s9 + $0xd8] sm:$0xff]  ;;  %v2295_v44 = vld [vmem:[%s3928_s9 + $0xd0] sm:$0xff] }
 0x338   :  { %v2294_v60 = vld [vmem:[%s3928_s9 + $0xc8] sm:$0xff]  ;;  %v1908_v18 = vld [vmem:[%s3930_s11 + $0x38] sm:$0xff] }
 0x339   :  { %v2380_v3 = vpop.eup %2379  ;;  %v1492_v10 = vadd.f32 %v3625_v32, %v1478_v2  ;;  %v1493_v11 = vadd.f32 %v3627_v26, %v1479_v1 }
 0x33a   :  { %v2382_v12 = vpop.eup %2381  ;;  %1555 = vmatmul.f32.gmra.mxu2 %v2380_v3  ;;  %v2311_v3 = vld [vmem:[%s3928_s9 + $0x130] sm:$0xff] }
 0x33b   :  { %2383 = vtanh.f32 %v1492_v10  ;;  %2266 = vmatmul.msk.f32.gmra.mxu3 %vm103_vm1, %v2382_v12  ;;  %v2324_v10 = vld [vmem:[%s3928_s9 + $0x178] sm:$0xff]  ;;  %v2323_v12 = vld [vmem:[%s3928_s9 + $0x170] sm:$0xff] }
 0x33c   :  { %2385 = vtanh.f32 %v1493_v11  ;;  %v2309_v11 = vld [vmem:[%s3928_s9 + $0x120] sm:$0xff] }
 0x33e   :  { %v1442_v38 = vpop.f32.mrf.mxu0  ;;  %v1471_v5 = vpop.f32.mrf.mxu1 }
 0x33f   :  { %v1480_v13 = vadd.f32 %v1442_v38, %v1372_v54  ;;  %v1481_v0 = vadd.f32 %v1471_v5, %v1373_v49  ;;  %v2308_v54 = vld [vmem:[%s3928_s9 + $0x118] sm:$0xff]  ;;  %v2293_v49 = vld [vmem:[%s3928_s9 + $0xc0] sm:$0xff]  ;;  %v2307_v38 = vld [vmem:[%s3928_s9 + $0x110] sm:$0xff] }
 0x340   :  { %v2322_v5 = vld [vmem:[%s3928_s9 + $0x168] sm:$0xff] }
 0x341   :  { %v2384_v14 = vpop.eup %2383  ;;  %v1494_v15 = vadd.f32 %v3625_v32, %v1480_v13  ;;  %v1495_v16 = vadd.f32 %v3627_v26, %v1481_v0  ;;  %v1629_v32 = vld [vmem:[%s3928_s9 + $0x38] sm:$0xff]  ;;  %v1628_v26 = vld [vmem:[%s3928_s9 + $0x30] sm:$0xff]  ;;  %v2306_v0 = vld [vmem:[%s3928_s9 + $0x108] sm:$0xff] }
 0x342   :  { %v2386_v17 = vpop.eup %2385  ;;  %1558 = vmatmul.f32.gmra.mxu2 %v2384_v14  ;;  %1703 = vmatpush.msra.mxu3 %v1629_v32  ;;  %v2292_v13 = vld [vmem:[%s3928_s9 + $0xb8] sm:$0xff]  ;;  %v2321_v14 = vld [vmem:[%s3928_s9 + $0x160] sm:$0xff]  ;;  %v1915_v32 = vld [vmem:[%s3930_s11 + $0x70] sm:$0xff] }
 0x343   :  { %2387 = vtanh.f32 %v1494_v15  ;;  %2267 = vmatmul.msk.f32.gmra.mxu3 %vm103_vm1, %v2386_v17  ;;  %v2291_v15 = vld [vmem:[%s3928_s9 + $0xb0] sm:$0xff]  ;;  %v2320_v17 = vld [vmem:[%s3928_s9 + $0x158] sm:$0xff] }
 0x344   :  { %2389 = vtanh.f32 %v1495_v16  ;;  %1704 = vmatpush.msra.mxu3 %v1628_v26  ;;  %v2305_v16 = vld [vmem:[%s3928_s9 + $0x100] sm:$0xff] }
 0x346   :  { %1705 = vmatpush.msra.mxu3 %v1627_v28  ;;  %v1912_v28 = vld [vmem:[%s3930_s11 + $0x58] sm:$0xff] }
 0x348   :  { %1706 = vmatpush.msra.mxu3 %v1626_v35 }
 0x349   :  { %v2388_v51 = vpop.eup %2387 }
 0x34a   :  { %v2390_v19 = vpop.eup %2389  ;;  %1561 = vmatmul.f32.gmra.mxu2 %v2388_v51  ;;  %1707 = vmatpush.msra.mxu3 %v1625_v43  ;;  %v2290_v51 = vld [vmem:[%s3928_s9 + $0xa8] sm:$0xff] }
 0x34b   :  { %2268 = vmatmul.msk.f32.gmra.mxu3 %vm103_vm1, %v2390_v19  ;;  %v2304_v19 = vld [vmem:[%s3928_s9 + $0xf8] sm:$0xff]  ;;  %s2421_s9 = smov [#allocation2]  }
 0x34c   :  { %1708 = vmatpush.msra.mxu3 %v1624_v24  ;;  %s1992_s18 = sshll.u32 %s2421_s9, 4  ;;  %s1993_s18 = int_to_ptr.vmem [resolvable:$true] %s1992_s18 }
 0x34e   :  { %1709 = vmatpush.msra.mxu3 %v1623_v22  ;;  %v1909_v22 = vld [vmem:[%s3930_s11 + $0x40] sm:$0xff] }
 0x350   :  { %1710 = vmatpush.msra.mxu3 %v1622_v58  ;;  %v1907_v58 = vld [vmem:[%s3930_s11 + $0x30] sm:$0xff] }
 0x3b5   :  { %v1553_v62 = vpop.f32.mrf.mxu2 }
 0x3b6   :  { %v1582_v53 = vpop.f32.mrf.mxu3 }
 0x3b7   :  { %v1583_v55 = vadd.f32 %v1582_v53, %v1553_v62  ;;  %v1906_v62 = vld [vmem:[%s3930_s11 + $0x28] sm:$0xff]  ;;  %v1905_v53 = vld [vmem:[%s3930_s11 + $0x20] sm:$0xff] }
 0x3bd   :  { %v1556_v52 = vpop.f32.mrf.mxu2 }
 0x3be   :  { %v1585_v23 = vpop.f32.mrf.mxu3 }
 0x3bf   :  { %v1586_v7 = vadd.f32 %v1585_v23, %v1556_v52  ;;  %v1904_v52 = vld [vmem:[%s3930_s11 + $0x18] sm:$0xff]  ;;  %v1903_v23 = vld [vmem:[%s3930_s11 + $0x10] sm:$0xff] }
 0x3c5   :  { %v1559_v48 = vpop.f32.mrf.mxu2 }
 0x3c6   :  { %v1588_v50 = vpop.f32.mrf.mxu3 }
 0x3c7   :  { %v1589_v27 = vadd.f32 %v1588_v50, %v1559_v48  ;;  %v1902_v48 = vld [vmem:[%s3930_s11 + $0x8] sm:$0xff]  ;;  %v1901_v50 = vld [vmem:[%s3930_s11] sm:$0xff] }
 0x3cd   :  { %v1562_v9 = vpop.f32.mrf.mxu2 }
 0x3ce   :  { %v1591_v30 = vpop.f32.mrf.mxu3 }
 0x3cf   :  { %v1592_v42 = vadd.f32 %v1591_v30, %v1562_v9  ;;  %v1955_v9 = vld [vmem:[%s3932_s13 + $0x50] sm:$0xf]  ;;  %v1954_v30 = vld [vmem:[%s3932_s13 + $0x48] sm:$0xff] }
 0x3d1   :  { %2269 = vmatpush.msk.msra.mxu0 %vm587_vm4, %v1592_v42  ;;  %2272 = vmatpush.msk.msra.mxu1 %vm587_vm4, %v1592_v42 }
 0x3d2   :  { %2287 = vmatpush.msk.msrb.mxu3 %vm587_vm4, %v1592_v42  ;;  %2301 = vmatpush.msk.msrb.mxu2 %vm587_vm4, %v1592_v42 }
 0x3d3   :  { %1615 = vmatpush.msra.mxu0 %v1589_v27  ;;  %1650 = vmatpush.msra.mxu1 %v1589_v27 }
 0x3d4   :  { %1733 = vmatpush.msrb.mxu3 %v1589_v27  ;;  %1793 = vmatpush.msrb.mxu2 %v1589_v27 }
 0x3d5   :  { %1616 = vmatpush.msra.mxu0 %v1586_v7  ;;  %1651 = vmatpush.msra.mxu1 %v1586_v7 }
 0x3d6   :  { %1734 = vmatpush.msrb.mxu3 %v1586_v7  ;;  %1794 = vmatpush.msrb.mxu2 %v1586_v7 }
 0x3d7   :  { %1617 = vmatpush.msra.mxu0 %v1583_v55  ;;  %1652 = vmatpush.msra.mxu1 %v1583_v55 }
 0x3d8   :  { %1735 = vmatpush.msrb.mxu3 %v1583_v55  ;;  %1795 = vmatpush.msrb.mxu2 %v1583_v55 }
 0x3d9   :  { %2270 = vmatmul.msk.f32.vlgmr.msra.gmra.mxu0 %vm1595_vm11, %v1594_v46  ;;  %2273 = vmatmul.msk.f32.vlgmr.msra.gmra.mxu1 %vm1595_vm11, %v2271_v47 }
 0x3da   :  { %2315 = vmatpush.msk.msrb.mxu0 %vm587_vm4, %v1592_v42  ;;  %1760 = vmatpush.msrb.mxu1 %v2298_v59  ;;  %v1953_v42 = vld [vmem:[%s3932_s13 + $0x40] sm:$0xff] }
 0x3dc   :  { %1853 = vmatpush.msrb.mxu0 %v1589_v27  ;;  %1761 = vmatpush.msrb.mxu1 %v2297_v63  ;;  %v1952_v27 = vld [vmem:[%s3932_s13 + $0x38] sm:$0xff] }
 0x3de   :  { %1854 = vmatpush.msrb.mxu0 %v1586_v7  ;;  %1762 = vmatpush.msrb.mxu1 %v2296_v56  ;;  %v1951_v7 = vld [vmem:[%s3932_s13 + $0x30] sm:$0xff]  ;;  %v2340_v56 = vld [vmem:[%s3929_s10] ss:$0 sm:$0xff] }
 0x3e0   :  { %1855 = vmatpush.msrb.mxu0 %v1583_v55  ;;  %1763 = vmatpush.msrb.mxu1 %v2295_v44  ;;  %v1950_v55 = vld [vmem:[%s3932_s13 + $0x28] sm:$0xff] }
 0x3e1   :  { %2316 = vmatmul.msk.f32.vlgmr.msrb.gmra.mxu0 %vm1595_vm11, %v2314_v40 }
 0x3e2   :  { %1764 = vmatpush.msrb.mxu1 %v2294_v60  ;;  %1925 = vmatpush.msra.mxu0 %v1915_v32 }
 0x3e4   :  { %1765 = vmatpush.msrb.mxu1 %v2293_v49  ;;  %1926 = vmatpush.msra.mxu0 %v1914_v36 }
 0x3e6   :  { %1766 = vmatpush.msrb.mxu1 %v2292_v13  ;;  %1927 = vmatpush.msra.mxu0 %v1913_v37 }
 0x3e8   :  { %1767 = vmatpush.msrb.mxu1 %v2291_v15  ;;  %1928 = vmatpush.msra.mxu0 %v1912_v28 }
 0x3ea   :  { %1768 = vmatpush.msrb.mxu1 %v2290_v51  ;;  %1929 = vmatpush.msra.mxu0 %v1911_v33 }
 0x3ec   :  { %1769 = vmatpush.msrb.mxu1 %v2289_v21  ;;  %1930 = vmatpush.msra.mxu0 %v1910_v34 }
 0x3ee   :  { %1931 = vmatpush.msra.mxu0 %v1909_v22  ;;  %2329 = vmatpush.msk.msra.mxu1 %vm587_vm4, %v1955_v9 }
 0x3f0   :  { %1932 = vmatpush.msra.mxu0 %v1908_v18  ;;  %1972 = vmatpush.msra.mxu1 %v1954_v30 }
 0x3f2   :  { %1933 = vmatpush.msra.mxu0 %v1907_v58  ;;  %1973 = vmatpush.msra.mxu1 %v1953_v42 }
 0x3f4   :  { %1934 = vmatpush.msra.mxu0 %v1906_v62  ;;  %1974 = vmatpush.msra.mxu1 %v1952_v27 }
 0x3f6   :  { %1935 = vmatpush.msra.mxu0 %v1905_v53  ;;  %1975 = vmatpush.msra.mxu1 %v1951_v7 }
 0x3f8   :  { %1936 = vmatpush.msra.mxu0 %v1904_v52  ;;  %1976 = vmatpush.msra.mxu1 %v1950_v55 }
 0x3fa   :  { %1937 = vmatpush.msra.mxu0 %v1903_v23 }
 0x3fc   :  { %1938 = vmatpush.msra.mxu0 %v1902_v48 }
 0x3fe   :  { %1939 = vmatpush.msra.mxu0 %v1901_v50 }
 0x456   :  { %v1619_v2 = vpop.f32.mrf.mxu0  ;;  %v1654_v1 = vpop.f32.mrf.mxu1 }
 0x457   :  { %2284 = vmatmul.msk.f32.vlgmr.msra.gmra.mxu2 %vm1668_vm12, %v1654_v1  ;;  %2285 = vmatmul.msk.f32.vlgmr.msra.gmra.mxu3 %vm1668_vm12, %v1619_v2  ;;  %v1948_v2 = vld [vmem:[%s3932_s13 + $0x18] sm:$0xff]  ;;  %v1947_v1 = vld [vmem:[%s3932_s13 + $0x10] sm:$0xff] }
 0x458   :  { %1820 = vmatpush.msra.mxu3 %v2312_v39  ;;  %1880 = vmatpush.msra.mxu2 %v2326_v61  ;;  %v1949_v61 = vld [vmem:[%s3932_s13 + $0x20] sm:$0xff] }
 0x459   :  { %1977 = vmatpush.msra.mxu1 %v1949_v61 }
 0x45a   :  { %1821 = vmatpush.msra.mxu3 %v2311_v3  ;;  %1881 = vmatpush.msra.mxu2 %v2325_v4  ;;  %v1946_v3 = vld [vmem:[%s3932_s13 + $0x8] sm:$0xff]  ;;  %v1945_v4 = vld [vmem:[%s3932_s13] sm:$0xff] }
 0x45b   :  { %1978 = vmatpush.msra.mxu1 %v1948_v2 }
 0x45c   :  { %1822 = vmatpush.msra.mxu3 %v2310_v8  ;;  %1882 = vmatpush.msra.mxu2 %v2324_v10  ;;  %v2341_v8 = vld [vmem:[%s3931_s12] ss:$0 sm:$0xff] }
 0x45d   :  { %1979 = vmatpush.msra.mxu1 %v1947_v1 }
 0x45e   :  { %1823 = vmatpush.msra.mxu3 %v2309_v11  ;;  %1883 = vmatpush.msra.mxu2 %v2323_v12  ;;  %v1857_v26 = vpop.f32.mrf.mxu0 }
 0x45f   :  { %2288 = vmatmul.msk.f32.vlgmr.msrb.gmra.mxu3 %vm1595_vm11, %v2286_v6  ;;  %2302 = vmatmul.msk.f32.vlgmr.msrb.gmra.mxu2 %vm1595_vm11, %v2300_v57  ;;  %v2342_v6 = vld [vmem:[%s3933_s14] ss:$0 sm:$0xff] }
 0x460   :  { %1824 = vmatpush.msra.mxu3 %v2308_v54  ;;  %1884 = vmatpush.msra.mxu2 %v2322_v5 }
 0x461   :  { %1980 = vmatpush.msra.mxu1 %v1946_v3 }
 0x462   :  { %1825 = vmatpush.msra.mxu3 %v2307_v38  ;;  %1885 = vmatpush.msra.mxu2 %v2321_v14 }
 0x463   :  { %1981 = vmatpush.msra.mxu1 %v1945_v4 }
 0x464   :  { %1826 = vmatpush.msra.mxu3 %v2306_v0  ;;  %1886 = vmatpush.msra.mxu2 %v2320_v17 }
 0x466   :  { %1827 = vmatpush.msra.mxu3 %v2305_v16  ;;  %1887 = vmatpush.msra.mxu2 %v2319_v20 }
 0x468   :  { %1828 = vmatpush.msra.mxu3 %v2304_v19  ;;  %1888 = vmatpush.msra.mxu2 %v2318_v29 }
 0x46a   :  { %1829 = vmatpush.msra.mxu3 %v2303_v25  ;;  %1889 = vmatpush.msra.mxu2 %v2317_v31 }
 0x46b   :  { %2327 = vmatmul.msk.f32.vlgmr.msra.gmra.mxu2 %vm1668_vm12, %v1857_v26 }
 0x4da   :  { %v1689_v35 = vpop.f32.mrf.mxu2  ;;  %v1712_v41 = vpop.f32.mrf.mxu3 }
 0x4db   :  { %v1713_v43 = vadd.f32 %v1712_v41, %v1689_v35 }
 0x4e2   :  { %v1737_v45 = vpop.f32.mrf.mxu3  ;;  %v1797_v24 = vpop.f32.mrf.mxu2 }
 0x4e3   :  { %2299 = vmatmul.msk.f32.vlgmr.msrb.gmra.mxu1 %vm1668_vm12, %v1737_v45  ;;  %2313 = vmatmul.msk.f32.vlgmr.msra.gmra.mxu3 %vm1668_vm12, %v1797_v24 }
 0x4ee   :  { %v1891_v59 = vpop.f32.mrf.mxu2 }
 0x560   :  { %v1771_v46 = vpop.f32.mrf.mxu1 }
 0x561   :  { %v1774_v47 = vadd.f32 %v1771_v46, %v1713_v43 }
 0x566   :  { %v1831_v40 = vpop.f32.mrf.mxu3 }
 0x567   :  { %v1834_v63 = vadd.f32 %v1831_v40, %v1774_v47 }
 0x569   :  { %v1894_v44 = vadd.f32 %v1891_v59, %v1834_v63 }
 0x56b   :  { %v1899_v60 = vadd.f32 %v2340_v56, %v1894_v44 }
 0x56d   :  { %2391 = vtanh.f32 %v1899_v60 }
 0x573   :  { %v2392_v39 = vpop.eup %2391 }
 0x574   :  { %2328 = vmatmul.msk.f32.vlgmr.msra.gmra.mxu0 %vm1920_vm13, %v2392_v39 }
 0x5f1   :  { %v1941_v10 = vpop.f32.mrf.mxu0 }
 0x5f2   :  { %v1942_v11 = vadd.f32 %v2341_v8, %v1941_v10 }
 0x5f4   :  { %2393 = vtanh.f32 %v1942_v11 }
 0x5fa   :  { %v2394_v12 = vpop.eup %2393 }
 0x5fb   :  { %2330 = vmatmul.msk.f32.vlgmr.msra.gmra.mxu1 %vm996_vm7, %v2394_v12 }
 0x678   :  { %v1983_v57 = vpop.f32.mrf.mxu1 }
 0x679   :  { %v1984_v54 = vadd.f32 %v2342_v6, %v1983_v57 }
 0x67b   :  { %1986 = vst [vmem:[#allocation2] sm:$0x3] %v1984_v54 }
 0x67c   :  { %1997 = dma.vmem_to_hbm [thread:$0]  %s1993_s18, 32, %s1995_s7, [#allocation3]  }
 0x67d   :  { %2419 = dma.done.wait [#allocation3], 32  }
 0x67e   :  { %2420 = vsyncadd [#allocation3], 4294967264 }
 0x67f   :  { %2002 = vsyncpa [#allocation3], 1 }

</bundles_post_ra>
